<compile_context>
chip_gen: v5e
topology: v5e:2x2
jax: 0.10.0
libtpu: 0.0.40
codegen_flags: <defaults>
</compile_context>

<pallas_src>
import functools

import jax
import jax.numpy as jnp
from jax.experimental import pallas as pl
from jax.experimental.pallas import tpu as pltpu

# Quantization levels (bits=8, symmetric=True -> qbias=False)
Q_W_LEVEL_HIGH = 127.0   # signed weight fake-quant
Q_W_LEVEL_LOW = -128.0
Q_A_LEVEL_HIGH = 255.0   # unsigned activation fake-quant


def _conv_bn_relu_quant_kernel(qparams_ref, x_ref, w_ref, beta_ref, out_ref, *,
                               tile_h, W, Cin, Coutp, KH, KW):
    # grid = (N, Hp // tile_h); axis 1 selects the output-row tile in the image.
    r = pl.program_id(1)
    row0 = pl.multiple_of(r * tile_h, tile_h)

    # One read of the padded input row band (tile_h + KH - 1 rows, full width).
    # The image block is shared across all row tiles of a batch element, so it
    # is DMA'd from HBM only once per image (no im2col redundancy).
    xband = x_ref[pl.ds(row0, tile_h + KH - 1), :, :]     # (tile_h+KH-1, W+KW-1, Cin) f32

    # Implicit GEMM over the KH*KW filter taps; contraction dim is Cin.
    # (For production Cin >= 128 this fills the MXU lanes; Cin=4 here is a toy.)
    acc = jnp.zeros((tile_h * W, Coutp), jnp.float32)
    for di in range(KH):
        for dj in range(KW):
            a = xband[di:di + tile_h, dj:dj + W, :].reshape(tile_h * W, Cin)
            acc = acc + jnp.dot(a.astype(jnp.bfloat16), w_ref[di * KW + dj],
                                preferred_element_type=jnp.float32)

    # Epilogue: folded conv-bias + BN shift (gamma already folded into W), ReLU,
    # unsigned 8-bit activation fake-quant with reciprocal multiply.  ReLU + round
    # guarantees >= 0, so only the upper clip is needed.
    y = jnp.maximum(acc + beta_ref[...], 0.0)
    a_step = qparams_ref[0]
    inv_a_step = qparams_ref[1]
    y_q = jnp.minimum(jnp.round(y * inv_a_step), Q_A_LEVEL_HIGH) * a_step
    out_ref[...] = y_q.astype(out_ref.dtype)


def quantized_conv_bn_relu(x_nchw, w_oihw, b, gamma, beta, mean, var,
                           w_scale, a_scale, *, eps=1e-5, tile_h=8):
    """Forward of QuantizedNetwork wrapping Conv2d(3x3, SAME) -> BN(eval) -> ReLU."""
    N, Cin, H, W = x_nchw.shape
    Cout, Cin_w, KH, KW = w_oihw.shape
    assert Cin_w == Cin and KH % 2 == 1 and KW % 2 == 1
    ph, pw = KH // 2, KW // 2

    w_scale = jnp.asarray(w_scale, jnp.float32)
    a_scale = jnp.asarray(a_scale, jnp.float32)

    # ---- weight fake-quant hoisted out of the kernel (done once, not per tile) ----
    w_step = w_scale / Q_W_LEVEL_HIGH
    w_q = jnp.clip(jnp.round(w_oihw / w_step),
                   Q_W_LEVEL_LOW, Q_W_LEVEL_HIGH) * w_step

    # ---- fold eval-mode BN into the weight and a single per-channel shift ----
    gamma_eff = gamma / jnp.sqrt(var + eps)
    beta_fold = (b - mean) * gamma_eff + beta
    w_eff = w_q * gamma_eff[:, None, None, None]                 # (Cout, Cin, KH, KW)

    # ---- lane-dense output: pad Cout up to a multiple of 128 (sliced off below) ----
    Coutp = ((Cout + 127) // 128) * 128
    w_taps = jnp.transpose(w_eff, (2, 3, 1, 0)).reshape(KH * KW, Cin, Cout)
    w_taps = jnp.pad(w_taps, ((0, 0), (0, 0), (0, Coutp - Cout))).astype(jnp.bfloat16)
    beta_p = jnp.pad(beta_fold, (0, Coutp - Cout)).reshape(1, Coutp).astype(jnp.float32)

    # ---- NHWC + SAME padding; pad H up to a multiple of tile_h (cdiv-robust grid) ----
    tile_h = max(1, min(tile_h, H))
    nr = pl.cdiv(H, tile_h)
    Hp = nr * tile_h
    x = jnp.transpose(x_nchw, (0, 2, 3, 1))
    xpad = jnp.pad(x, ((0, 0), (ph, ph + (Hp - H)), (pw, pw), (0, 0))).astype(jnp.float32)

    # activation quantizer params in SMEM: [a_step, 1/a_step] (reciprocal multiply)
    a_step = a_scale / Q_A_LEVEL_HIGH
    qparams = jnp.stack([a_step, Q_A_LEVEL_HIGH / a_scale]).astype(jnp.float32)

    kernel = functools.partial(_conv_bn_relu_quant_kernel, tile_h=tile_h, W=W,
                               Cin=Cin, Coutp=Coutp, KH=KH, KW=KW)

    # NOTE: tile_h (and hence the tile_h*W output tile) should be swept per TPU
    # generation: larger on v5e/v6e (128 MiB VMEM, raise vmem_limit_bytes), more
    # conservative on v7x (64 MiB VMEM) while keeping >= 4-8 grid steps so both
    # v7x TensorCores get work.  For very large H*W, additionally block W / use a
    # manual halo DMA instead of keeping the full padded image resident.
    out = pl.pallas_call(
        kernel,
        out_shape=jax.ShapeDtypeStruct((N * Hp * W, Coutp), jnp.float32),
        grid=(N, nr),
        in_specs=[
            pl.BlockSpec(memory_space=pltpu.SMEM),                          # [a_step, 1/a_step]
            pl.BlockSpec((None, Hp + KH - 1, W + KW - 1, Cin),
                         lambda n, r: (n, 0, 0, 0)),                        # padded image (read once/img)
            pl.BlockSpec((KH * KW, Cin, Coutp), lambda n, r: (0, 0, 0)),    # folded bf16 weights
            pl.BlockSpec((1, Coutp), lambda n, r: (0, 0)),                  # folded bias/BN shift
        ],
        out_specs=pl.BlockSpec((tile_h * W, Coutp), lambda n, r: (n * nr + r, 0)),
        compiler_params=pltpu.CompilerParams(
            dimension_semantics=("parallel", "parallel")),
    )(qparams, xpad, w_taps, beta_p)

    # [N*Hp*W, Coutp] -> NHWC (trim pad) -> NCHW (match PyTorch output convention)
    out = out.reshape(N, Hp, W, Coutp)[:, :H, :, :Cout]
    return jnp.transpose(out, (0, 3, 1, 2))


def _reference(x_nchw, w_oihw, b, gamma, beta, mean, var, w_scale, a_scale,
               eps=1e-5):
    # Pure-JAX f32 reference of the same quantized forward (module semantics).
    step_w = w_scale / Q_W_LEVEL_HIGH
    w_q = jnp.clip(jnp.round(w_oihw / step_w),
                   Q_W_LEVEL_LOW, Q_W_LEVEL_HIGH) * step_w
    y = jax.lax.conv_general_dilated(
        x_nchw, w_q, window_strides=(1, 1), padding='SAME',
        dimension_numbers=('NCHW', 'OIHW', 'NCHW'))
    y = y + b.reshape(1, -1, 1, 1)
    g = (gamma / jnp.sqrt(var + eps)).reshape(1, -1, 1, 1)
    bt = (beta - mean * gamma / jnp.sqrt(var + eps)).reshape(1, -1, 1, 1)
    y = jnp.maximum(y * g + bt, 0.0)
    step_a = a_scale / Q_A_LEVEL_HIGH
    return jnp.clip(jnp.round(y / step_a),
                    Q_A_LEVEL_LOW := 0.0, Q_A_LEVEL_HIGH) * step_a


if __name__ == "__main__":
    # Small shapes consistent with a wrapped Conv2d(4 -> 8, 3x3) + BN + ReLU.
    N, Cin, H, W = 2, 4, 16, 16
    Cout, KH, KW = 8, 3, 3

    key = jax.random.PRNGKey(0)
    kx, kw, kb, kg, kbt, km, kv = jax.random.split(key, 7)

    x = jax.random.normal(kx, (N, Cin, H, W), dtype=jnp.float32)
    w = jax.random.normal(kw, (Cout, Cin, KH, KW), dtype=jnp.float32) * 0.1
    b = jax.random.normal(kb, (Cout,), dtype=jnp.float32) * 0.05
    gamma = jax.random.uniform(kg, (Cout,), jnp.float32, 0.5, 1.5)
    beta = jax.random.normal(kbt, (Cout,), dtype=jnp.float32) * 0.1
    mean = jax.random.normal(km, (Cout,), dtype=jnp.float32) * 0.1
    var = jax.random.uniform(kv, (Cout,), jnp.float32, 0.5, 1.5)

    # Quantizer scales (NNCF learns these; initialize deterministically here).
    w_scale = jnp.max(jnp.abs(w))              # weight range init (max-abs)
    a_scale = jnp.float32(4.0)                 # activation range init

    # TODO(synk): quantize_inputs=False (default) — input-quantization hook omitted.

    out = quantized_conv_bn_relu(x, w, b, gamma, beta, mean, var,
                                 w_scale, a_scale)
    out = jax.block_until_ready(out)

    ref = _reference(x, w, b, gamma, beta, mean, var, w_scale, a_scale)
    assert out.shape == (N, Cout, H, W)
    # Allow one activation-quant step of slack: bf16 matmul / reciprocal-multiply
    # perturbations can flip rounding at a bin boundary by at most one bin.
    err = float(jnp.max(jnp.abs(out - ref)))
    assert err <= float(a_scale) / Q_A_LEVEL_HIGH + 1e-5, err

    print("KERNEL_OK")
</pallas_src>

<mosaic_0001>
module attributes {stable_mosaic.version = 11 : i64} {
  func.func @_conv_bn_relu_quant_kernel(%arg0: i32, %arg1: i32, %arg2: memref<2xf32, #tpu.memory_space<smem>>, %arg3: memref<1x18x18x4xf32, #tpu.memory_space<vmem>>, %arg4: memref<9x4x128xbf16, #tpu.memory_space<vmem>>, %arg5: memref<1x128xf32, #tpu.memory_space<vmem>>, %arg6: memref<128x128xf32, #tpu.memory_space<vmem>>) attributes {dimension_semantics = [#tpu.dimension_semantics<parallel>, #tpu.dimension_semantics<parallel>], iteration_bounds = array<i64: 2, 2>, scalar_prefetch = 0 : i64, scratch_operands = 0 : i64, tpu.core_type = #tpu.core_type<tc>, window_params = [{transform_indices = @transform_0, window_bounds = array<i64: 2>}, {transform_indices = @transform_1, window_bounds = array<i64: 1, 18, 18, 4>}, {pipeline_mode = #tpu.pipeline_mode<synchronous>, transform_indices = @transform_2, window_bounds = array<i64: 9, 4, 128>}, {pipeline_mode = #tpu.pipeline_mode<synchronous>, transform_indices = @transform_3, window_bounds = array<i64: 1, 128>}, {transform_indices = @transform_4, window_bounds = array<i64: 128, 128>}]} {
    %c8_i32 = arith.constant 8 : i32
    %0 = arith.muli %arg1, %c8_i32 : i32
    %1 = tpu.assume_multiple %0, 8 : i32
    %c0 = arith.constant 0 : index
    %2 = arith.index_cast %1 : i32 to index
    %c0_0 = arith.constant 0 : index
    %c0_1 = arith.constant 0 : index
    %3 = vector.load %arg3[%c0, %2, %c0_0, %c0_1] : memref<1x18x18x4xf32, #tpu.memory_space<vmem>>, vector<1x10x18x4xf32>
    %4 = vector.shape_cast %3 : vector<1x10x18x4xf32> to vector<10x18x4xf32>
    %cst = arith.constant 0.000000e+00 : f32
    %5 = vector.broadcast %cst : f32 to vector<128x128xf32>
    %6 = vector.extract_strided_slice %4 {offsets = [0, 0, 0], sizes = [8, 16, 4], strides = [1, 1, 1]} : vector<10x18x4xf32> to vector<8x16x4xf32>
    %7 = vector.shape_cast %6 : vector<8x16x4xf32> to vector<128x4xf32>
    %8 = arith.truncf %7 : vector<128x4xf32> to vector<128x4xbf16>
    %c0_2 = arith.constant 0 : index
    %c0_3 = arith.constant 0 : index
    %c0_4 = arith.constant 0 : index
    %9 = vector.load %arg4[%c0_2, %c0_3, %c0_4] : memref<9x4x128xbf16, #tpu.memory_space<vmem>>, vector<1x4x128xbf16>
    %10 = vector.shape_cast %9 : vector<1x4x128xbf16> to vector<4x128xbf16>
    %cst_5 = arith.constant dense<0.000000e+00> : vector<128x128xf32>
    %11 = tpu.matmul %8, %10, %cst_5 {dimension_numbers = #tpu.dot_dimension_numbers<[1], [0], [0], [1], [0, 0, 1, 1], [], []>} : vector<128x4xbf16>, vector<4x128xbf16>, vector<128x128xf32> -> vector<128x128xf32>
    %12 = arith.addf %5, %11 : vector<128x128xf32>
    %13 = vector.extract_strided_slice %4 {offsets = [0, 1, 0], sizes = [8, 16, 4], strides = [1, 1, 1]} : vector<10x18x4xf32> to vector<8x16x4xf32>
    %14 = vector.shape_cast %13 : vector<8x16x4xf32> to vector<128x4xf32>
    %15 = arith.truncf %14 : vector<128x4xf32> to vector<128x4xbf16>
    %c1 = arith.constant 1 : index
    %c0_6 = arith.constant 0 : index
    %c0_7 = arith.constant 0 : index
    %16 = vector.load %arg4[%c1, %c0_6, %c0_7] : memref<9x4x128xbf16, #tpu.memory_space<vmem>>, vector<1x4x128xbf16>
    %17 = vector.shape_cast %16 : vector<1x4x128xbf16> to vector<4x128xbf16>
    %cst_8 = arith.constant dense<0.000000e+00> : vector<128x128xf32>
    %18 = tpu.matmul %15, %17, %cst_8 {dimension_numbers = #tpu.dot_dimension_numbers<[1], [0], [0], [1], [0, 0, 1, 1], [], []>} : vector<128x4xbf16>, vector<4x128xbf16>, vector<128x128xf32> -> vector<128x128xf32>
    %19 = arith.addf %12, %18 : vector<128x128xf32>
    %20 = vector.extract_strided_slice %4 {offsets = [0, 2, 0], sizes = [8, 16, 4], strides = [1, 1, 1]} : vector<10x18x4xf32> to vector<8x16x4xf32>
    %21 = vector.shape_cast %20 : vector<8x16x4xf32> to vector<128x4xf32>
    %22 = arith.truncf %21 : vector<128x4xf32> to vector<128x4xbf16>
    %c2 = arith.constant 2 : index
    %c0_9 = arith.constant 0 : index
    %c0_10 = arith.constant 0 : index
    %23 = vector.load %arg4[%c2, %c0_9, %c0_10] : memref<9x4x128xbf16, #tpu.memory_space<vmem>>, vector<1x4x128xbf16>
    %24 = vector.shape_cast %23 : vector<1x4x128xbf16> to vector<4x128xbf16>
    %cst_11 = arith.constant dense<0.000000e+00> : vector<128x128xf32>
    %25 = tpu.matmul %22, %24, %cst_11 {dimension_numbers = #tpu.dot_dimension_numbers<[1], [0], [0], [1], [0, 0, 1, 1], [], []>} : vector<128x4xbf16>, vector<4x128xbf16>, vector<128x128xf32> -> vector<128x128xf32>
    %26 = arith.addf %19, %25 : vector<128x128xf32>
    %27 = vector.extract_strided_slice %4 {offsets = [1, 0, 0], sizes = [8, 16, 4], strides = [1, 1, 1]} : vector<10x18x4xf32> to vector<8x16x4xf32>
    %28 = vector.shape_cast %27 : vector<8x16x4xf32> to vector<128x4xf32>
    %29 = arith.truncf %28 : vector<128x4xf32> to vector<128x4xbf16>
    %c3 = arith.constant 3 : index
    %c0_12 = arith.constant 0 : index
    %c0_13 = arith.constant 0 : index
    %30 = vector.load %arg4[%c3, %c0_12, %c0_13] : memref<9x4x128xbf16, #tpu.memory_space<vmem>>, vector<1x4x128xbf16>
    %31 = vector.shape_cast %30 : vector<1x4x128xbf16> to vector<4x128xbf16>
    %cst_14 = arith.constant dense<0.000000e+00> : vector<128x128xf32>
    %32 = tpu.matmul %29, %31, %cst_14 {dimension_numbers = #tpu.dot_dimension_numbers<[1], [0], [0], [1], [0, 0, 1, 1], [], []>} : vector<128x4xbf16>, vector<4x128xbf16>, vector<128x128xf32> -> vector<128x128xf32>
    %33 = arith.addf %26, %32 : vector<128x128xf32>
    %34 = vector.extract_strided_slice %4 {offsets = [1, 1, 0], sizes = [8, 16, 4], strides = [1, 1, 1]} : vector<10x18x4xf32> to vector<8x16x4xf32>
    %35 = vector.shape_cast %34 : vector<8x16x4xf32> to vector<128x4xf32>
    %36 = arith.truncf %35 : vector<128x4xf32> to vector<128x4xbf16>
    %c4 = arith.constant 4 : index
    %c0_15 = arith.constant 0 : index
    %c0_16 = arith.constant 0 : index
    %37 = vector.load %arg4[%c4, %c0_15, %c0_16] : memref<9x4x128xbf16, #tpu.memory_space<vmem>>, vector<1x4x128xbf16>
    %38 = vector.shape_cast %37 : vector<1x4x128xbf16> to vector<4x128xbf16>
    %cst_17 = arith.constant dense<0.000000e+00> : vector<128x128xf32>
    %39 = tpu.matmul %36, %38, %cst_17 {dimension_numbers = #tpu.dot_dimension_numbers<[1], [0], [0], [1], [0, 0, 1, 1], [], []>} : vector<128x4xbf16>, vector<4x128xbf16>, vector<128x128xf32> -> vector<128x128xf32>
    %40 = arith.addf %33, %39 : vector<128x128xf32>
    %41 = vector.extract_strided_slice %4 {offsets = [1, 2, 0], sizes = [8, 16, 4], strides = [1, 1, 1]} : vector<10x18x4xf32> to vector<8x16x4xf32>
    %42 = vector.shape_cast %41 : vector<8x16x4xf32> to vector<128x4xf32>
    %43 = arith.truncf %42 : vector<128x4xf32> to vector<128x4xbf16>
    %c5 = arith.constant 5 : index
    %c0_18 = arith.constant 0 : index
    %c0_19 = arith.constant 0 : index
    %44 = vector.load %arg4[%c5, %c0_18, %c0_19] : memref<9x4x128xbf16, #tpu.memory_space<vmem>>, vector<1x4x128xbf16>
    %45 = vector.shape_cast %44 : vector<1x4x128xbf16> to vector<4x128xbf16>
    %cst_20 = arith.constant dense<0.000000e+00> : vector<128x128xf32>
    %46 = tpu.matmul %43, %45, %cst_20 {dimension_numbers = #tpu.dot_dimension_numbers<[1], [0], [0], [1], [0, 0, 1, 1], [], []>} : vector<128x4xbf16>, vector<4x128xbf16>, vector<128x128xf32> -> vector<128x128xf32>
    %47 = arith.addf %40, %46 : vector<128x128xf32>
    %48 = vector.extract_strided_slice %4 {offsets = [2, 0, 0], sizes = [8, 16, 4], strides = [1, 1, 1]} : vector<10x18x4xf32> to vector<8x16x4xf32>
    %49 = vector.shape_cast %48 : vector<8x16x4xf32> to vector<128x4xf32>
    %50 = arith.truncf %49 : vector<128x4xf32> to vector<128x4xbf16>
    %c6 = arith.constant 6 : index
    %c0_21 = arith.constant 0 : index
    %c0_22 = arith.constant 0 : index
    %51 = vector.load %arg4[%c6, %c0_21, %c0_22] : memref<9x4x128xbf16, #tpu.memory_space<vmem>>, vector<1x4x128xbf16>
    %52 = vector.shape_cast %51 : vector<1x4x128xbf16> to vector<4x128xbf16>
    %cst_23 = arith.constant dense<0.000000e+00> : vector<128x128xf32>
    %53 = tpu.matmul %50, %52, %cst_23 {dimension_numbers = #tpu.dot_dimension_numbers<[1], [0], [0], [1], [0, 0, 1, 1], [], []>} : vector<128x4xbf16>, vector<4x128xbf16>, vector<128x128xf32> -> vector<128x128xf32>
    %54 = arith.addf %47, %53 : vector<128x128xf32>
    %55 = vector.extract_strided_slice %4 {offsets = [2, 1, 0], sizes = [8, 16, 4], strides = [1, 1, 1]} : vector<10x18x4xf32> to vector<8x16x4xf32>
    %56 = vector.shape_cast %55 : vector<8x16x4xf32> to vector<128x4xf32>
    %57 = arith.truncf %56 : vector<128x4xf32> to vector<128x4xbf16>
    %c7 = arith.constant 7 : index
    %c0_24 = arith.constant 0 : index
    %c0_25 = arith.constant 0 : index
    %58 = vector.load %arg4[%c7, %c0_24, %c0_25] : memref<9x4x128xbf16, #tpu.memory_space<vmem>>, vector<1x4x128xbf16>
    %59 = vector.shape_cast %58 : vector<1x4x128xbf16> to vector<4x128xbf16>
    %cst_26 = arith.constant dense<0.000000e+00> : vector<128x128xf32>
    %60 = tpu.matmul %57, %59, %cst_26 {dimension_numbers = #tpu.dot_dimension_numbers<[1], [0], [0], [1], [0, 0, 1, 1], [], []>} : vector<128x4xbf16>, vector<4x128xbf16>, vector<128x128xf32> -> vector<128x128xf32>
    %61 = arith.addf %54, %60 : vector<128x128xf32>
    %62 = vector.extract_strided_slice %4 {offsets = [2, 2, 0], sizes = [8, 16, 4], strides = [1, 1, 1]} : vector<10x18x4xf32> to vector<8x16x4xf32>
    %63 = vector.shape_cast %62 : vector<8x16x4xf32> to vector<128x4xf32>
    %64 = arith.truncf %63 : vector<128x4xf32> to vector<128x4xbf16>
    %c8 = arith.constant 8 : index
    %c0_27 = arith.constant 0 : index
    %c0_28 = arith.constant 0 : index
    %65 = vector.load %arg4[%c8, %c0_27, %c0_28] : memref<9x4x128xbf16, #tpu.memory_space<vmem>>, vector<1x4x128xbf16>
    %66 = vector.shape_cast %65 : vector<1x4x128xbf16> to vector<4x128xbf16>
    %cst_29 = arith.constant dense<0.000000e+00> : vector<128x128xf32>
    %67 = tpu.matmul %64, %66, %cst_29 {dimension_numbers = #tpu.dot_dimension_numbers<[1], [0], [0], [1], [0, 0, 1, 1], [], []>} : vector<128x4xbf16>, vector<4x128xbf16>, vector<128x128xf32> -> vector<128x128xf32>
    %68 = arith.addf %61, %67 : vector<128x128xf32>
    %c0_30 = arith.constant 0 : index
    %c0_31 = arith.constant 0 : index
    %69 = vector.load %arg5[%c0_30, %c0_31] : memref<1x128xf32, #tpu.memory_space<vmem>>, vector<1x128xf32>
    %70 = vector.broadcast %69 : vector<1x128xf32> to vector<128x128xf32>
    %71 = arith.addf %68, %70 : vector<128x128xf32>
    %cst_32 = arith.constant 0.000000e+00 : f32
    %72 = vector.broadcast %cst_32 : f32 to vector<128x128xf32>
    %73 = arith.maximumf %71, %72 : vector<128x128xf32>
    %c0_33 = arith.constant 0 : index
    %74 = memref.load %arg2[%c0_33] : memref<2xf32, #tpu.memory_space<smem>>
    %c1_34 = arith.constant 1 : index
    %75 = memref.load %arg2[%c1_34] : memref<2xf32, #tpu.memory_space<smem>>
    %76 = vector.broadcast %75 : f32 to vector<128x128xf32>
    %77 = arith.mulf %73, %76 : vector<128x128xf32>
    %78 = math.roundeven %77 : vector<128x128xf32>
    %cst_35 = arith.constant 2.550000e+02 : f32
    %79 = vector.broadcast %cst_35 : f32 to vector<128x128xf32>
    %80 = arith.minimumf %78, %79 : vector<128x128xf32>
    %81 = vector.broadcast %74 : f32 to vector<128x128xf32>
    %82 = arith.mulf %80, %81 : vector<128x128xf32>
    %c0_36 = arith.constant 0 : index
    %c0_37 = arith.constant 0 : index
    %83 = vector.load %arg6[%c0_36, %c0_37] : memref<128x128xf32, #tpu.memory_space<vmem>>, vector<128x128xf32>
    tpu.vector_store %arg6[%c0_36, %c0_37], %82 {strides = array<i32>} : memref<128x128xf32, #tpu.memory_space<vmem>>, vector<128x128xf32>,
    return
  }
  func.func @transform_0(%arg0: i32, %arg1: i32) -> i32 {
    %c0_i32 = arith.constant 0 : i32
    %c0_i32_0 = arith.constant 0 : i32
    return %c0_i32 : i32
  }
  func.func @transform_1(%arg0: i32, %arg1: i32) -> (i32, i32, i32, i32) {
    %c0_i32 = arith.constant 0 : i32
    %c0_i32_0 = arith.constant 0 : i32
    %c0_i32_1 = arith.constant 0 : i32
    %c0_i32_2 = arith.constant 0 : i32
    return %arg0, %c0_i32, %c0_i32_0, %c0_i32_1 : i32, i32, i32, i32
  }
  func.func @transform_2(%arg0: i32, %arg1: i32) -> (i32, i32, i32) {
    %c0_i32 = arith.constant 0 : i32
    %c0_i32_0 = arith.constant 0 : i32
    %c0_i32_1 = arith.constant 0 : i32
    %c0_i32_2 = arith.constant 0 : i32
    return %c0_i32, %c0_i32_0, %c0_i32_1 : i32, i32, i32
  }
  func.func @transform_3(%arg0: i32, %arg1: i32) -> (i32, i32) {
    %c0_i32 = arith.constant 0 : i32
    %c0_i32_0 = arith.constant 0 : i32
    %c0_i32_1 = arith.constant 0 : i32
    return %c0_i32, %c0_i32_0 : i32, i32
  }
  func.func @transform_4(%arg0: i32, %arg1: i32) -> (i32, i32) {
    %c2_i32 = arith.constant 2 : i32
    %0 = arith.muli %arg0, %c2_i32 : i32
    %1 = arith.addi %0, %arg1 : i32
    %c0_i32 = arith.constant 0 : i32
    %c0_i32_0 = arith.constant 0 : i32
    return %1, %c0_i32 : i32, i32
  }
}

</mosaic_0001>

<bundles_post_ra>
// kernel: tpu_custom_call.1
= control target key start
LH: loop header
LB: loop body
LE: loop exit
PB: predicated region body
PF: predicated region fallthrough
CT: control target
= control target key end

     0   :  { %9 = vsyncpa [#allocation4], 0  ;;  %s2538_s0 = inlined_call_operand.vmem [shape: f32[2], index: 0, kind: input, shape index: {}]   ;;  %s2539_s1 = inlined_call_operand.vmem [shape: f32[2,18,18,4], index: 1, kind: input, shape index: {}]   ;;  %s2540_s2 = inlined_call_operand.vmem [shape: bf16[9,4,128], index: 2, kind: input, shape index: {}]   ;;  %s2541_s3 = inlined_call_operand.vmem [shape: f32[1,128], index: 3, kind: input, shape index: {}]   ;;  %s2542_s4 = inlined_call_operand.hbm [shape: f32[512,128], index: 4, kind: output, shape index: {}]  }
   0x1   :  { %10 = vsyncpa [#allocation3], 0 }
   0x2   :  { %12 = vsyncpa [#allocation3 + $0x1], 0  ;;  %s1842_s15 = smov 0   ;;  %s1844_s16 = smov 0  }
   0x3   :  { %s1846_s17 = smov 0   ;;  %s1848_s18 = smov 0  }
   0x4   :  { %s1850_s19 = smov 0   ;;  %s1852_s20 = smov 0  }
   0x5   :  { %s1854_s21 = smov 0   ;;  %s1856_s22 = smov 0  }
   0x6 LB: > { %s1381_s23 = sadd.s32 4294967295, %s1812_s22   ;;  %s1382_s24 = sadd.s32 4294967294, %s1812_s22   ;;  %s1812_s22 = sphi %s1856_s22, %s18_s22   ;;  %s1808_s21 = sphi %s1854_s21, %s2551_s21   ;;  %s1804_s20 = sphi %s1852_s20, %s2550_s20   ;;  %s1800_s19 = sphi %s1850_s19, %s2549_s19   ;;  %s1796_s18 = sphi %s1848_s18, %s2548_s18   ;;  %s1792_s17 = sphi %s1846_s17, %s2547_s17   ;;  %s1788_s16 = sphi %s1844_s16, %s2546_s16   ;;  %s1784_s15 = sphi %s1842_s15, %s2545_s15  }
   0x7   : > { %s27_s25 = sadd.s32 1, %s1804_s20  ;;  %s30_s26 = sadd.s32 1, %s1808_s21 }
   0x8   : > { %p28_p0 = scmp.ge.s32.totalorder %s27_s25, 2  ;;  %s1383_s27 = sshll.u32 %s1808_s21, 1 }
   0x9   : > { %s124_s28 = sadd.s32 %s1804_s20, %s1383_s27  ;;  %s130_s29 = sadd.s32 1, %s1792_s17 }
   0xa   : > { %s2553_s25 = smov (%p28_p0, %s27_s25), 0  ;;  %s2555_s26 = smov (!%p28_p0, %s30_s26), %s1808_s21 }
   0xb   : > { %p140_p1 = scmp.ne.s32.totalorder %s1792_s17, %s1788_s16  ;;  %p141_p2 = scmp.eq.s32.totalorder %s1381_s23, 3 }
   0xc   : > { %p32_p3 = scmp.ge.s32.totalorder %s2555_s26, 2  ;;  %p146_p4 = scmp.ne.s32.totalorder %s1788_s16, %s1784_s15 }
   0xd   : > { %p1896_p5 = por %p141_p2, %p140_p1  ;;  %p147_p6 = scmp.eq.s32.totalorder %s1382_s24, 3 }
   0xe   : > { %s2557_s26 = smov (%p32_p3, %s2555_s26), 0  ;;  %p1385_p8 = scmp.ge.s32.totalorder %s1812_s22, 1 }
   0xf   : > { %p1902_p7 = por %p147_p6, %p146_p4  ;;  %s1384_s6 = sshll.u32 %s2557_s26, 1 }
  0x10   : > { %p154_p9 = scmp.lt.s32.totalorder %s1812_s22, 5  ;;  %s126_s7 = sadd.s32 %s1384_s6, %s2553_s25 }
  0x11   : > { %s127_s8 = ssub.s32 %s124_s28, %s126_s7  ;;  %p1628_p12 = scmp.eq.s32.totalorder %s1381_s23, 0 }
  0x12   : > { %p155_p10 = pnand %p1385_p8, %p154_p9  ;;  %p128_p11 = scmp.eq.s32.totalorder %s127_s8, 0 }
  0x13   : > { %s166_s11 = sshll.u32 %s2538_s0, 4  ;;  %s1814_s13 = smov [#allocation2]   ;;  %s167_s11 = int_to_ptr.vmem [resolvable:$true] %s166_s11 }
  0x14   : > { %p1620_p13 = pneg %p155_p10  ;;  %193 = sbr.rel (%p155_p10) target bundleno = 485 (0x1e5), region = 36 }
  0x15   : > { %s1914_s12 = scalar_select %p128_p11, %s1792_s17, %s130_s29  }
  0x16   : > { %p1621_p0 = pnand %p1628_p12, %p1620_p13 }
  0x18   : > { %1623 = dma.vmem_to_smem (!%p1621_p0), %s167_s11, 16, %s1814_s13, [#allocation4]  }
  0x19   : > { %1775 = dma.done.wait (%p1628_p12), [#allocation4], 16  }
  0x1a   : > { %1777 = vsyncadd (%p1628_p12), [#allocation4], 4294967280 }
  0x1b   : > { %200 = sfence }
  0x1c   : > { %v1394_v0 = vld [vmem:[%s2540_s2 + $0x2] sm:$0x3]  ;;  %vm388_vm0 = vcmask 1041408   ;;  %p221_p1 = scmp.lt.s32.totalorder %s1800_s19, 1  ;;  %v1411_v2 = vld [vmem:[%s2540_s2 + $0x4] sm:$0x3] }
  0x1d   : > { %v390_v1 = vsel %vm388_vm0, %v1394_v0, 0  ;;  %v1420_v3 = vld [vmem:[%s2540_s2 + $0x6] sm:$0x3]  ;;  %v609_v4 = vsel %vm388_vm0, %v1411_v2, 0  ;;  %v271_v6 = vld [vmem:[%s2540_s2] sm:$0x3] }
  0x1e   : > { %1482 = vmatpush.bf16.msra.mxu1 %v390_v1  ;;  %1483 = vmatpush.bf16.msra.mxu2 %v390_v1  ;;  %s222_s6 = scalar_select %p221_p1, %s1800_s19, 1  ;;  %v683_v5 = vsel %vm388_vm0, %v1420_v3, 0  ;;  %v466_v7 = vsel %vm388_vm0, %v271_v6, 0  ;;  %v1429_v8 = vld [vmem:[%s2540_s2 + $0x8] sm:$0x3]  ;;  %vm296_vm1 = vcmask 1046528  }
  0x1f   : > { %1484 = vmatpush.bf16.msra.mxu3 %v390_v1  ;;  %399 = vmatpush.bf16.msra.mxu0 %v390_v1  ;;  %s1393_s9 = smul.u32 192, %s1796_s18  ;;  %v767_v9 = vsel %vm388_vm0, %v1429_v8, 0  ;;  %vm363_vm2 = vcmask 31744   ;;  %v1447_v63 = vld [vmem:[%s2540_s2 + $0xc] sm:$0x3]  ;;  %vm517_vm3 = vcmask 1045504  }
  0x20   : > { %s1485_s13 = smul.u32 432, %s222_s6  ;;  %v1456_v1 = vld [vmem:[%s2540_s2 + $0xe] sm:$0x3]  ;;  %v1438_v2 = vld [vmem:[%s2540_s2 + $0xa] sm:$0x3]  ;;  %s1476_s6 = sshll.u32 %s1800_s19, 1 }
  0x21   : > { %v1465_v3 = vld [vmem:[%s2540_s2 + $0x10] sm:$0x3]  ;;  %s1283_s7 = sadd.s32 %s1796_s18, %s1476_s6  ;;  %s1734_s6 = scalar_lea.hbm %s2542_s4, 512 }
  0x22   : > { %618 = vmatpush.bf16.msrb.mxu2 %v609_v4  ;;  %475 = vmatpush.bf16.msrb.mxu1 %v466_v7  ;;  %s225_s23 = scalar_lea.vmem %s2539_s1, %s1485_s13  ;;  %s1474_s13 = sld [smem:[#allocation2 + $0x1]] }
  0x23   : > { %692 = vmatpush.bf16.msrb.mxu3 %v683_v5  ;;  %776 = vmatpush.bf16.msrb.mxu0 %v767_v9  ;;  %s1942_s27 = scalar_lea.vmem %s225_s23, %s1393_s9  ;;  %s1190_s23 = sld [smem:[#allocation2]] }
  0x24   : > { %v1945_v10 = vld [vmem:[%s1942_s27 + $0x30] sm:$0xff]  ;;  %v1948_v11 = vld [vmem:[%s1942_s27 + $0x38] sm:$0xff]  ;;  %v1951_v12 = vld [vmem:[%s1942_s27 + $0x40] sm:$0x3]  ;;  %s1481_s8 = sshll.u32 %s1283_s7, 7 }
  0x25   : > { %v307_v13 = vrot.slane %v1945_v10, 1  ;;  %v308_v14 = vrot.slane %v1948_v11, 1  ;;  %v310_v15 = vrot.slane %v1951_v12, 1  ;;  %v1957_v16 = vld [vmem:[%s1942_s27 + $0x60] sm:$0xff]  ;;  %v1960_v17 = vld [vmem:[%s1942_s27 + $0x68] sm:$0xff]  ;;  %v1963_v18 = vld [vmem:[%s1942_s27 + $0x90] sm:$0xff]  ;;  %s1288_s10 = scalar_lea.hbm %s2542_s4, %s1481_s8 }
  0x26   : > { %v1966_v19 = vld [vmem:[%s1942_s27 + $0x70] sm:$0x3]  ;;  %v317_v20 = vrot.slane %v1957_v16, 1  ;;  %v318_v21 = vrot.slane %v1960_v17, 1  ;;  %v1971_v22 = vld [vmem:[%s1942_s27 + $0x98] sm:$0xff]  ;;  %v327_v23 = vrot.slane %v1963_v18, 1 }
  0x27   : > { %v309_v24 = vsel %vm296_vm1, %v307_v13, %v308_v14  ;;  %v311_v25 = vsel %vm296_vm1, %v308_v14, %v310_v15  ;;  %v320_v26 = vrot.slane %v1966_v19, 1  ;;  %v1978_v27 = vld [vmem:[%s1942_s27 + $0xa0] sm:$0x3]  ;;  %v328_v28 = vrot.slane %v1971_v22, 1  ;;  %v1985_v30 = vld [vmem:[%s1942_s27 + $0x8] sm:$0xff]  ;;  %v2003_v41 = vld [vmem:[%s1942_s27 + $0x50] sm:$0xff] }
  0x28   : > { %v1982_v29 = vld [vmem:[%s1942_s27] sm:$0xff]  ;;  %v1987_v31 = vpack.c.bf16 %v311_v25, %v309_v24  ;;  %v319_v32 = vsel %vm296_vm1, %v317_v20, %v318_v21  ;;  %v330_v33 = vrot.slane %v1978_v27, 1  ;;  %v1992_v34 = vld [vmem:[%s1942_s27 + $0x10] sm:$0x3]  ;;  %v298_v38 = vrot.slane %v1985_v30, 1  ;;  %v2000_v40 = vld [vmem:[%s1942_s27 + $0x48] sm:$0xff] }
  0x29   : > { %v297_v35 = vrot.slane %v1982_v29, 1  ;;  %v321_v36 = vsel %vm296_vm1, %v318_v21, %v320_v26  ;;  %v329_v37 = vsel %vm296_vm1, %v327_v23, %v328_v28  ;;  %v300_v39 = vrot.slane %v1992_v34, 1  ;;  %v2011_v44 = vld [vmem:[%s1942_s27 + $0x58] sm:$0x3]  ;;  %v2025_v52 = vld [vmem:[%s1942_s27 + $0x80] sm:$0xff]  ;;  %v2034_v55 = vld [vmem:[%s1942_s27 + $0xa8] sm:$0xff] }
  0x2a   : > { %1397 = vmatmul.msk.bf16.vlgmr.msra.gmra.mxu1 %vm363_vm2, %v1987_v31  ;;  %v2007_v42 = vpack.c.bf16 %v321_v36, %v319_v32  ;;  %v331_v43 = vsel %vm296_vm1, %v328_v28, %v330_v33  ;;  %v312_v49 = vrot.slane %v2000_v40, 1  ;;  %v313_v50 = vrot.slane %v2003_v41, 1  ;;  %v2022_v51 = vld [vmem:[%s1942_s27 + $0x78] sm:$0xff]  ;;  %v2031_v54 = vld [vmem:[%s1942_s27 + $0x88] sm:$0x3]  ;;  %v2037_v56 = vld [vmem:[%s1942_s27 + $0xb0] sm:$0xff] }
  0x2b   : > { %v2013_v45 = vpack.c.bf16 %v331_v43, %v329_v37  ;;  %v299_v46 = vsel %vm296_vm1, %v297_v35, %v298_v38  ;;  %v301_v47 = vsel %vm296_vm1, %v298_v38, %v300_v39  ;;  %v315_v53 = vrot.slane %v2011_v44, 1  ;;  %v2041_v57 = vld [vmem:[%s1942_s27 + $0xb8] sm:$0x3]  ;;  %v2047_v59 = vld [vmem:[%s1942_s27 + $0x20] sm:$0xff]  ;;  %v238_v62 = vld [vmem:[%s1942_s27 + $0x28] sm:$0x3] }
  0x2c   : > { %1399 = vmatmul.msk.bf16.vlgmr.msra.gmra.mxu2 %vm363_vm2, %v2007_v42  ;;  %v353_v48 = vpack.c.bf16 %v301_v47, %v299_v46  ;;  %v2044_v58 = vld [vmem:[%s1942_s27 + $0x18] sm:$0xff]  ;;  %v322_v60 = vrot.slane %v2022_v51, 1  ;;  %v323_v61 = vrot.slane %v2025_v52, 1  ;;  %v314_v0 = vsel %vm296_vm1, %v312_v49, %v313_v50  ;;  %s1291_s11 = sshll.u32 %s1288_s10, 4  ;;  %s1292_s11 = int_to_ptr.hbm [resolvable:$true] %s1291_s11 }
  0x2d   : > { %1401 = vmatmul.msk.bf16.vlgmr.msra.gmra.mxu3 %vm363_vm2, %v2013_v45  ;;  %v316_v4 = vsel %vm296_vm1, %v313_v50, %v315_v53  ;;  %v325_v5 = vrot.slane %v2031_v54, 1  ;;  %v332_v6 = vrot.slane %v2034_v55, 1  ;;  %v333_v7 = vrot.slane %v2037_v56, 1  ;;  %s1728_s14 = sshra.s32 %s1292_s11, 4  ;;  %s1729_s14 = int_to_ptr.hbm [resolvable:$true] %s1728_s14 }
  0x2e   : > { %1395 = vmatmul.msk.bf16.vlgmr.msra.gmra.mxu0 %vm363_vm2, %v353_v48  ;;  %v335_v8 = vrot.slane %v2041_v57, 1  ;;  %v302_v9 = vrot.slane %v2044_v58, 1  ;;  %v303_v13 = vrot.slane %v2047_v59, 1  ;;  %v922_v14 = vsel %vm388_vm0, %v1447_v63, 0  ;;  %s1730_s24 = scalar_lea.hbm %s1729_s14, 128  ;;  %p1735_p6 = scmp.lt.s32.totalorder %s1729_s14, %s2542_s4 }
  0x2f   : > { %v305_v15 = vrot.slane %v238_v62, 1  ;;  %931 = vmatpush.bf16.msra.mxu2 %v922_v14  ;;  %v1006_v20 = vsel %vm388_vm0, %v1456_v1, 0  ;;  %v848_v21 = vsel %vm388_vm0, %v1438_v2, 0  ;;  %v1087_v23 = vsel %vm388_vm0, %v1465_v3, 0  ;;  %p1731_p2 = scmp.ne.s32.totalorder %s1729_s14, %s1730_s24  ;;  %p1736_p8 = scmp.lt.s32.totalorder %s1734_s6, %s1730_s24 }
  0x30   : > { %1015 = vmatpush.bf16.msra.mxu3 %v1006_v20  ;;  %857 = vmatpush.bf16.msra.mxu1 %v848_v21  ;;  %v324_v24 = vsel %vm296_vm1, %v322_v60, %v323_v61  ;;  %v326_v25 = vsel %vm296_vm1, %v323_v61, %v325_v5  ;;  %v2078_v26 = vpack.c.bf16 %v316_v4, %v314_v0  ;;  %v521_v39 = vrot.slane %v1992_v34, 2 }
  0x31   : > { %1096 = vmatpush.bf16.msra.mxu0 %v1087_v23  ;;  %v334_v28 = vsel %vm296_vm1, %v332_v6, %v333_v7  ;;  %v336_v32 = vsel %vm296_vm1, %v333_v7, %v335_v8  ;;  %v304_v33 = vsel %vm296_vm1, %v302_v9, %v303_v13  ;;  %v306_v35 = vsel %vm296_vm1, %v303_v13, %v305_v15  ;;  %p1732_p3 = pnand %p1731_p2, %p1896_p5  ;;  %p1737_p9 = por %p1736_p8, %p1735_p6 }
  0x32   : > { %v2084_v36 = vpack.c.bf16 %v326_v25, %v324_v24  ;;  %v2086_v37 = vpack.c.bf16 %v336_v32, %v334_v28  ;;  %v354_v38 = vpack.c.bf16 %v306_v35, %v304_v33  ;;  %v518_v43 = vrot.slane %v1982_v29, 2 }
  0x33   : > { %v519_v46 = vrot.slane %v1985_v30, 2  ;;  %v263_v49 = vpack.c.bf16 %v1985_v30, %v1982_v29  ;;  %v528_v53 = vrot.slane %v1945_v10, 2  ;;  %v529_v60 = vrot.slane %v1948_v11, 2  ;;  %p1733_p4 = pneg %p1732_p3 }
  0x34   : > { %v531_v61 = vrot.slane %v1951_v12, 2  ;;  %v264_v34 = vpack.c.bf16 %v2047_v59, %v2044_v58  ;;  %v523_v29 = vrot.slane %v2044_v58, 2  ;;  %v524_v12 = vrot.slane %v2047_v59, 2 }
  0x35   : > { %v520_v47 = vsel %vm517_vm3, %v518_v43, %v519_v46  ;;  %v522_v48 = vsel %vm517_vm3, %v519_v46, %v521_v39  ;;  %v530_v63 = vsel %vm517_vm3, %v528_v53, %v529_v60  ;;  %v526_v30 = vrot.slane %v238_v62, 2  ;;  %v2229_v39 = vld [vmem:[%s1942_s27 + $0xc0] sm:$0xff]  ;;  %v2232_v43 = vld [vmem:[%s1942_s27 + $0xc8] sm:$0xff]  ;;  %v2235_v46 = vld [vmem:[%s1942_s27 + $0xd0] sm:$0x3]  ;;  %p1738_p10 = pnand %p1737_p9, %p1733_p4 }
  0x36   : > { %v574_v50 = vpack.c.bf16 %v522_v48, %v520_v47  ;;  %v532_v0 = vsel %vm517_vm3, %v529_v60, %v531_v61  ;;  %v525_v2 = vsel %vm517_vm3, %v523_v29, %v524_v12  ;;  %v533_v5 = vrot.slane %v2000_v40, 2 }
  0x37   : > { %v2110_v1 = vpack.c.bf16 %v532_v0, %v530_v63  ;;  %v527_v3 = vsel %vm517_vm3, %v524_v12, %v526_v30  ;;  %v534_v6 = vrot.slane %v2003_v41, 2  ;;  %v536_v7 = vrot.slane %v2011_v44, 2 }
  0x38   : > { %v2119_v4 = vpack.c.bf16 %v527_v3, %v525_v2  ;;  %v2126_v8 = vpack.c.bf16 %v1948_v11, %v1945_v10  ;;  %v2141_v10 = vpack.c.bf16 %v2003_v41, %v2000_v40  ;;  %v2153_v11 = vpack.c.bf16 %v1960_v17, %v1957_v16 }
  0x39   : > { %v535_v58 = vsel %vm517_vm3, %v533_v5, %v534_v6  ;;  %v537_v59 = vsel %vm517_vm3, %v534_v6, %v536_v7  ;;  %v538_v40 = vrot.slane %v1957_v16, 2  ;;  %v539_v41 = vrot.slane %v1960_v17, 2 }
  0x3a   : > { %1398 = vmatmul.msk.bf16.gmra.mxu1 %vm363_vm2, %v2078_v26  ;;  %v2131_v62 = vpack.c.bf16 %v537_v59, %v535_v58  ;;  %v541_v44 = vrot.slane %v1966_v19, 2  ;;  %v2172_v15 = vpack.c.bf16 %v2025_v52, %v2022_v51  ;;  %v543_v16 = vrot.slane %v2022_v51, 2 }
  0x3b   : > { %v540_v9 = vsel %vm517_vm3, %v538_v40, %v539_v41  ;;  %v544_v17 = vrot.slane %v2025_v52, 2  ;;  %v546_v19 = vrot.slane %v2031_v54, 2  ;;  %v2191_v24 = vpack.c.bf16 %v1971_v22, %v1963_v18 }
  0x3c   : > { %1400 = vmatmul.msk.bf16.gmra.mxu2 %vm363_vm2, %v2084_v36  ;;  %v542_v13 = vsel %vm517_vm3, %v539_v41, %v541_v44  ;;  %v548_v51 = vrot.slane %v1963_v18, 2  ;;  %v549_v52 = vrot.slane %v1971_v22, 2  ;;  %v551_v54 = vrot.slane %v1978_v27, 2 }
  0x3d   : > { %1402 = vmatmul.msk.bf16.gmra.mxu3 %vm363_vm2, %v2086_v37  ;;  %v2168_v14 = vpack.c.bf16 %v542_v13, %v540_v9  ;;  %v545_v20 = vsel %vm517_vm3, %v543_v16, %v544_v17  ;;  %v547_v21 = vsel %vm517_vm3, %v544_v17, %v546_v19  ;;  %v2212_v35 = vpack.c.bf16 %v2037_v56, %v2034_v55 }
  0x3e   : > { %1396 = vmatmul.msk.bf16.gmra.mxu0 %vm363_vm2, %v354_v38  ;;  %v2187_v23 = vpack.c.bf16 %v547_v21, %v545_v20  ;;  %v550_v25 = vsel %vm517_vm3, %v548_v51, %v549_v52  ;;  %v552_v28 = vsel %vm517_vm3, %v549_v52, %v551_v54  ;;  %v553_v47 = vrot.slane %v2034_v55, 2 }
  0x3f   : > { %v2208_v33 = vpack.c.bf16 %v552_v28, %v550_v25  ;;  %v554_v48 = vrot.slane %v2037_v56, 2  ;;  %v753_v53 = vrot.slane %v2229_v39, 1  ;;  %v754_v60 = vrot.slane %v2232_v43, 1 }
  0x40   : > { %v756_v61 = vrot.slane %v2235_v46, 1  ;;  %v2257_v30 = vpack.c.bf16 %v2232_v43, %v2229_v39 }
  0x41   : > { %v755_v55 = vsel %vm296_vm1, %v753_v53, %v754_v60 }
  0x42   : > { %v757_v56 = vsel %vm296_vm1, %v754_v60, %v756_v61 }
  0x43   : > { %v2261_v2 = vpack.c.bf16 %v757_v56, %v755_v55 }
  0x4a   : > { %1403 = vmatmul.msk.bf16.vlgmr.msrb.gmra.mxu1 %vm363_vm2, %v263_v49  ;;  %v556_v49 = vrot.slane %v2041_v57, 2 }
  0x4c   : > { %1412 = vmatmul.msk.bf16.vlgmr.msrb.gmra.mxu2 %vm363_vm2, %v574_v50  ;;  %v557_v63 = vsel %vm517_vm3, %v554_v48, %v556_v49 }
  0x4d   : > { %1421 = vmatmul.msk.bf16.vlgmr.msrb.gmra.mxu3 %vm363_vm2, %v264_v34 }
  0x4e   : > { %1430 = vmatmul.msk.bf16.vlgmr.msrb.gmra.mxu0 %vm363_vm2, %v354_v38 }
  0x5a   : > { %1404 = vmatmul.msk.bf16.gmra.mxu1 %vm363_vm2, %v264_v34  ;;  %v555_v34 = vsel %vm517_vm3, %v553_v47, %v554_v48 }
  0x5b   : > { %v2253_v12 = vpack.c.bf16 %v557_v63, %v555_v34 }
  0x5c   : > { %1413 = vmatmul.msk.bf16.gmra.mxu2 %vm363_vm2, %v2119_v4 }
  0x5d   : > { %1422 = vmatmul.msk.bf16.gmra.mxu3 %vm363_vm2, %v2126_v8 }
  0x5e   : > { %1431 = vmatmul.msk.bf16.gmra.mxu0 %vm363_vm2, %v1987_v31 }
  0x6a   : > { %1405 = vmatmul.msk.bf16.gmra.mxu1 %vm363_vm2, %v2126_v8 }
  0x6c   : > { %1414 = vmatmul.msk.bf16.gmra.mxu2 %vm363_vm2, %v2110_v1 }
  0x6d   : > { %1423 = vmatmul.msk.bf16.gmra.mxu3 %vm363_vm2, %v2141_v10 }
  0x6e   : > { %1432 = vmatmul.msk.bf16.gmra.mxu0 %vm363_vm2, %v2078_v26 }
  0x7a   : > { %1406 = vmatmul.msk.bf16.gmra.mxu1 %vm363_vm2, %v2141_v10 }
  0x7c   : > { %1415 = vmatmul.msk.bf16.gmra.mxu2 %vm363_vm2, %v2131_v62 }
  0x7d   : > { %1424 = vmatmul.msk.bf16.gmra.mxu3 %vm363_vm2, %v2153_v11 }
  0x7e   : > { %1433 = vmatmul.msk.bf16.gmra.mxu0 %vm363_vm2, %v2007_v42 }
  0x8a   : > { %1407 = vmatmul.msk.bf16.gmra.mxu1 %vm363_vm2, %v2153_v11 }
  0x8c   : > { %1416 = vmatmul.msk.bf16.gmra.mxu2 %vm363_vm2, %v2168_v14 }
  0x8d   : > { %1425 = vmatmul.msk.bf16.gmra.mxu3 %vm363_vm2, %v2172_v15 }
  0x8e   : > { %1434 = vmatmul.msk.bf16.gmra.mxu0 %vm363_vm2, %v2084_v36 }
  0x9a   : > { %1408 = vmatmul.msk.bf16.gmra.mxu1 %vm363_vm2, %v2172_v15 }
  0x9c   : > { %1417 = vmatmul.msk.bf16.gmra.mxu2 %vm363_vm2, %v2187_v23 }
  0x9d   : > { %1426 = vmatmul.msk.bf16.gmra.mxu3 %vm363_vm2, %v2191_v24 }
  0x9e   : > { %1435 = vmatmul.msk.bf16.gmra.mxu0 %vm363_vm2, %v2013_v45 }
  0xa7   : > { %v2206_v32 = vpop.f32.mrf.mxu1 }
  0xaa   : > { %1409 = vmatmul.msk.bf16.gmra.mxu1 %vm363_vm2, %v2191_v24 }
  0xab   : > { %v401_v18 = vpop.f32.mrf.mxu0 }
  0xac   : > { %1418 = vmatmul.msk.bf16.gmra.mxu2 %vm363_vm2, %v2208_v33 }
  0xad   : > { %1427 = vmatmul.msk.bf16.gmra.mxu3 %vm363_vm2, %v2212_v35 }
  0xae   : > { %1436 = vmatmul.msk.bf16.gmra.mxu0 %vm363_vm2, %v2086_v37 }
  0xaf   : > { %v2222_v22 = vpop.f32.mrf.mxu2  ;;  %v2224_v27 = vpop.f32.mrf.mxu1 }
  0xb0   : > { %v2226_v38 = vpop.f32.mrf.mxu3 }
  0xb3   : > { %v403_v50 = vpop.f32.mrf.mxu0 }
  0xb7   : > { %v2245_v0 = vpop.f32.mrf.mxu2  ;;  %v2247_v29 = vpop.f32.mrf.mxu1 }
  0xb8   : > { %v2251_v57 = vpop.f32.mrf.mxu3 }
  0xba   : > { %1410 = vmatmul.msk.bf16.gmra.mxu1 %vm363_vm2, %v2212_v35 }
  0xbb   : > { %v406_v3 = vpop.f32.mrf.mxu0 }
  0xbc   : > { %1419 = vmatmul.msk.bf16.gmra.mxu2 %vm363_vm2, %v2253_v12 }
  0xbd   : > { %1428 = vmatmul.msk.bf16.gmra.mxu3 %vm363_vm2, %v2257_v30 }
  0xbe   : > { %1437 = vmatmul.msk.bf16.gmra.mxu0 %vm363_vm2, %v2261_v2 }
  0xbf   : > { %v2269_v5 = vpop.f32.mrf.mxu2  ;;  %v2271_v6 = vpop.f32.mrf.mxu1 }
  0xc0   : > { %v2273_v7 = vpop.f32.mrf.mxu3 }
  0xc3   : > { %v408_v58 = vpop.f32.mrf.mxu0 }
  0xc7   : > { %v2275_v59 = vpop.f32.mrf.mxu2  ;;  %v477_v40 = vpop.f32.mrf.mxu1 }
  0xc8   : > { %v2277_v41 = vpop.f32.mrf.mxu3  ;;  %v478_v44 = vadd.f32 %v477_v40, %v401_v18 }
  0xca   : > { %1439 = vmatmul.msk.bf16.vlgmr.msra.gmra.mxu1 %vm363_vm2, %v2119_v4 }
  0xcb   : > { %v778_v9 = vpop.f32.mrf.mxu0 }
  0xcc   : > { %1448 = vmatmul.msk.bf16.vlgmr.msra.gmra.mxu2 %vm363_vm2, %v2126_v8 }
  0xcd   : > { %1457 = vmatmul.msk.bf16.vlgmr.msra.gmra.mxu3 %vm363_vm2, %v1987_v31 }
  0xce   : > { %1466 = vmatmul.msk.bf16.vlgmr.msra.gmra.mxu0 %vm363_vm2, %v2110_v1 }
  0xcf   : > { %v620_v13 = vpop.f32.mrf.mxu2  ;;  %v479_v16 = vpop.f32.mrf.mxu1 }
  0xd0   : > { %v660_v17 = vadd.f32 %v620_v13, %v478_v44  ;;  %v694_v19 = vpop.f32.mrf.mxu3  ;;  %v480_v20 = vadd.f32 %v479_v16, %v403_v50 }
  0xd2   : > { %v734_v21 = vadd.f32 %v694_v19, %v660_v17 }
  0xd3   : > { %v780_v51 = vpop.f32.mrf.mxu0 }
  0xd4   : > { %v2287_v52 = vadd.f32 %v778_v9, %v734_v21 }
  0xd7   : > { %v622_v4 = vpop.f32.mrf.mxu2  ;;  %v482_v54 = vpop.f32.mrf.mxu1 }
  0xd8   : > { %v661_v25 = vadd.f32 %v622_v4, %v480_v20  ;;  %v696_v28 = vpop.f32.mrf.mxu3  ;;  %v483_v8 = vadd.f32 %v482_v54, %v406_v3 }
  0xda   : > { %v735_v18 = vadd.f32 %v696_v28, %v661_v25  ;;  %1440 = vmatmul.msk.bf16.gmra.mxu1 %vm363_vm2, %v2110_v1 }
  0xdb   : > { %v783_v31 = vpop.f32.mrf.mxu0 }
  0xdc   : > { %1449 = vmatmul.msk.bf16.gmra.mxu2 %vm363_vm2, %v2141_v10  ;;  %v2293_v47 = vadd.f32 %v780_v51, %v735_v18 }
  0xdd   : > { %1458 = vmatmul.msk.bf16.gmra.mxu3 %vm363_vm2, %v2078_v26 }
  0xde   : > { %1467 = vmatmul.msk.bf16.gmra.mxu0 %vm363_vm2, %v2131_v62 }
  0xdf   : > { %v625_v48 = vpop.f32.mrf.mxu2  ;;  %v484_v49 = vpop.f32.mrf.mxu1 }
  0xe0   : > { %v662_v50 = vadd.f32 %v625_v48, %v483_v8  ;;  %v699_v53 = vpop.f32.mrf.mxu3  ;;  %v485_v60 = vadd.f32 %v484_v49, %v408_v58 }
  0xe2   : > { %v736_v61 = vadd.f32 %v699_v53, %v662_v50  ;;  %v834_v50 = vrot.slane %v2229_v39, 2  ;;  %v835_v53 = vrot.slane %v2232_v43, 2 }
  0xe3   : > { %v785_v34 = vpop.f32.mrf.mxu0 }
  0xe4   : > { %v2299_v1 = vadd.f32 %v783_v31, %v736_v61 }
  0xe7   : > { %v627_v63 = vpop.f32.mrf.mxu2  ;;  %v487_v55 = vpop.f32.mrf.mxu1 }
  0xe8   : > { %v663_v10 = vadd.f32 %v627_v63, %v485_v60  ;;  %v701_v56 = vpop.f32.mrf.mxu3  ;;  %v488_v3 = vadd.f32 %v487_v55, %v2206_v32 }
  0xea   : > { %v737_v40 = vadd.f32 %v701_v56, %v663_v10  ;;  %1441 = vmatmul.msk.bf16.gmra.mxu1 %vm363_vm2, %v2131_v62 }
  0xeb   : > { %v788_v26 = vpop.f32.mrf.mxu0 }
  0xec   : > { %1450 = vmatmul.msk.bf16.gmra.mxu2 %vm363_vm2, %v2153_v11  ;;  %v2306_v44 = vadd.f32 %v785_v34, %v737_v40 }
  0xed   : > { %1459 = vmatmul.msk.bf16.gmra.mxu3 %vm363_vm2, %v2007_v42 }
  0xee   : > { %1468 = vmatmul.msk.bf16.gmra.mxu0 %vm363_vm2, %v2168_v14 }
  0xef   : > { %v630_v58 = vpop.f32.mrf.mxu2  ;;  %v489_v9 = vpop.f32.mrf.mxu1 }
  0xf0   : > { %v664_v13 = vadd.f32 %v630_v58, %v488_v3  ;;  %v704_v32 = vpop.f32.mrf.mxu3  ;;  %v490_v16 = vadd.f32 %v489_v9, %v2224_v27 }
  0xf2   : > { %v738_v17 = vadd.f32 %v704_v32, %v664_v13 }
  0xf3   : > { %v790_v62 = vpop.f32.mrf.mxu0 }
  0xf4   : > { %v2313_v19 = vadd.f32 %v788_v26, %v738_v17 }
  0xf7   : > { %v632_v20 = vpop.f32.mrf.mxu2  ;;  %v492_v11 = vpop.f32.mrf.mxu1 }
  0xf8   : > { %v665_v21 = vadd.f32 %v632_v20, %v490_v16  ;;  %v706_v51 = vpop.f32.mrf.mxu3  ;;  %v493_v4 = vadd.f32 %v492_v11, %v2247_v29 }
  0xfa   : > { %v739_v42 = vadd.f32 %v706_v51, %v665_v21  ;;  %1442 = vmatmul.msk.bf16.gmra.mxu1 %vm363_vm2, %v2168_v14 }
  0xfb   : > { %v793_v54 = vpop.f32.mrf.mxu0 }
  0xfc   : > { %1451 = vmatmul.msk.bf16.gmra.mxu2 %vm363_vm2, %v2172_v15  ;;  %v2320_v25 = vadd.f32 %v790_v62, %v739_v42 }
  0xfd   : > { %1460 = vmatmul.msk.bf16.gmra.mxu3 %vm363_vm2, %v2084_v36  ;;  %v837_v36 = vrot.slane %v2235_v46, 2 }
  0xfe   : > { %1469 = vmatmul.msk.bf16.gmra.mxu0 %vm363_vm2, %v2187_v23 }
  0xff   : > { %v635_v27 = vpop.f32.mrf.mxu2  ;;  %v494_v28 = vpop.f32.mrf.mxu1  ;;  %v838_v55 = vsel %vm517_vm3, %v835_v53, %v837_v36 }
 0x100   : > { %v666_v8 = vadd.f32 %v635_v27, %v493_v4  ;;  %v709_v29 = vpop.f32.mrf.mxu3  ;;  %v495_v18 = vadd.f32 %v494_v28, %v2271_v6  ;;  %v836_v6 = vsel %vm517_vm3, %v834_v50, %v835_v53 }
 0x101   : > { %v2342_v39 = vpack.c.bf16 %v838_v55, %v836_v6 }
 0x102   : > { %v740_v31 = vadd.f32 %v709_v29, %v666_v8 }
 0x103   : > { %v795_v14 = vpop.f32.mrf.mxu0 }
 0x104   : > { %v2327_v48 = vadd.f32 %v793_v54, %v740_v31  ;;  %v260_v31 = vld [vmem:[%s1942_s27 + $0xd8] sm:$0xff] }
 0x105   : > { %v992_v53 = vrot.slane %v260_v31, 1 }
 0x107   : > { %v637_v49 = vpop.f32.mrf.mxu2  ;;  %v497_v15 = vpop.f32.mrf.mxu1 }
 0x108   : > { %v667_v60 = vadd.f32 %v637_v49, %v495_v18  ;;  %v711_v61 = vpop.f32.mrf.mxu3  ;;  %v498_v43 = vadd.f32 %v497_v15, %v2222_v22  ;;  %v262_v49 = vld [vmem:[%s1942_s27 + $0xe8] sm:$0x3] }
 0x109   : > { %v995_v36 = vrot.slane %v262_v49, 1 }
 0x10a   : > { %v741_v34 = vadd.f32 %v711_v61, %v667_v60  ;;  %1443 = vmatmul.msk.bf16.gmra.mxu1 %vm363_vm2, %v2187_v23  ;;  %v1073_v61 = vrot.slane %v260_v31, 2 }
 0x10b   : > { %v798_v63 = vpop.f32.mrf.mxu0 }
 0x10c   : > { %1452 = vmatmul.msk.bf16.gmra.mxu2 %vm363_vm2, %v2191_v24  ;;  %v2338_v10 = vadd.f32 %v795_v14, %v741_v34  ;;  %v261_v14 = vld [vmem:[%s1942_s27 + $0xe0] sm:$0xff]  ;;  %s218_s27 = sand.u32 1, %s1788_s16  }
 0x10d   : > { %1461 = vmatmul.msk.bf16.gmra.mxu3 %vm363_vm2, %v2013_v45  ;;  %v1074_v34 = vrot.slane %v261_v14, 2  ;;  %s1390_s28 = sshll.u32 %s218_s27, 7 }
 0x10e   : > { %1470 = vmatmul.msk.bf16.gmra.mxu0 %vm363_vm2, %v2208_v33  ;;  %s2420_s29 = scalar_lea.vmem [#allocation5], %s1390_s28 }
 0x10f   : > { %v640_v23 = vpop.f32.mrf.mxu2  ;;  %v499_v46 = vpop.f32.mrf.mxu1  ;;  %s1289_s18 = sshll.u32 %s2420_s29, 4  ;;  %s1290_s18 = int_to_ptr.vmem [resolvable:$true] %s1289_s18 }
 0x110   : > { %v668_v56 = vadd.f32 %v640_v23, %v498_v43  ;;  %v714_v24 = vpop.f32.mrf.mxu3  ;;  %v500_v58 = vadd.f32 %v499_v46, %v2245_v0  ;;  %v1075_v46 = vsel %vm517_vm3, %v1073_v61, %v1074_v34 }
 0x112   : > { %v742_v3 = vadd.f32 %v714_v24, %v668_v56 }
 0x113   : > { %v800_v40 = vpop.f32.mrf.mxu0 }
 0x114   : > { %v2347_v26 = vadd.f32 %v798_v63, %v742_v3 }
 0x117   : > { %v642_v9 = vpop.f32.mrf.mxu2  ;;  %v502_v13 = vpop.f32.mrf.mxu1 }
 0x118   : > { %v669_v45 = vadd.f32 %v642_v9, %v500_v58  ;;  %v716_v32 = vpop.f32.mrf.mxu3  ;;  %v503_v62 = vadd.f32 %v502_v13, %v2269_v5 }
 0x11a   : > { %v743_v16 = vadd.f32 %v716_v32, %v669_v45  ;;  %1444 = vmatmul.msk.bf16.gmra.mxu1 %vm363_vm2, %v2208_v33 }
 0x11b   : > { %v803_v22 = vpop.f32.mrf.mxu0 }
 0x11c   : > { %1453 = vmatmul.msk.bf16.gmra.mxu2 %vm363_vm2, %v2212_v35  ;;  %v2354_v17 = vadd.f32 %v800_v40, %v743_v16  ;;  %v915_v40 = vpack.c.bf16 %v261_v14, %v260_v31 }
 0x11d   : > { %1462 = vmatmul.msk.bf16.gmra.mxu3 %vm363_vm2, %v2086_v37 }
 0x11e   : > { %1471 = vmatmul.msk.bf16.gmra.mxu0 %vm363_vm2, %v2253_v12 }
 0x11f   : > { %v645_v0 = vpop.f32.mrf.mxu2  ;;  %v504_v20 = vpop.f32.mrf.mxu1 }
 0x120   : > { %v670_v11 = vadd.f32 %v645_v0, %v503_v62  ;;  %v719_v21 = vpop.f32.mrf.mxu3  ;;  %v505_v35 = vadd.f32 %v504_v20, %v2275_v59 }
 0x122   : > { %v744_v51 = vadd.f32 %v719_v21, %v670_v11 }
 0x123   : > { %v805_v33 = vpop.f32.mrf.mxu0 }
 0x124   : > { %v2361_v4 = vadd.f32 %v803_v22, %v744_v51 }
 0x127   : > { %v647_v42 = vpop.f32.mrf.mxu2  ;;  %v507_v37 = vpop.f32.mrf.mxu1 }
 0x128   : > { %v671_v54 = vadd.f32 %v647_v42, %v505_v35  ;;  %v721_v5 = vpop.f32.mrf.mxu3  ;;  %v508_v59 = vadd.f32 %v507_v37, %v2226_v38 }
 0x12a   : > { %v745_v27 = vadd.f32 %v721_v5, %v671_v54  ;;  %1445 = vmatmul.msk.bf16.gmra.mxu1 %vm363_vm2, %v2253_v12 }
 0x12b   : > { %v808_v28 = vpop.f32.mrf.mxu0 }
 0x12c   : > { %1454 = vmatmul.msk.bf16.gmra.mxu2 %vm363_vm2, %v2257_v30  ;;  %v2368_v8 = vadd.f32 %v805_v33, %v745_v27  ;;  %v993_v30 = vrot.slane %v261_v14, 1 }
 0x12d   : > { %1463 = vmatmul.msk.bf16.gmra.mxu3 %vm363_vm2, %v2261_v2  ;;  %v1076_v2 = vrot.slane %v262_v49, 2 }
 0x12e   : > { %1472 = vmatmul.msk.bf16.gmra.mxu0 %vm363_vm2, %v2342_v39  ;;  %v994_v6 = vsel %vm296_vm1, %v992_v53, %v993_v30  ;;  %v996_v55 = vsel %vm296_vm1, %v993_v30, %v995_v36 }
 0x12f   : > { %v650_v29 = vpop.f32.mrf.mxu2  ;;  %v509_v18 = vpop.f32.mrf.mxu1  ;;  %v1077_v56 = vsel %vm517_vm3, %v1074_v34, %v1076_v2  ;;  %v999_v58 = vpack.c.bf16 %v996_v55, %v994_v6 }
 0x130   : > { %v672_v12 = vadd.f32 %v650_v29, %v508_v59  ;;  %v724_v15 = vpop.f32.mrf.mxu3  ;;  %v510_v38 = vadd.f32 %v509_v18, %v2251_v57  ;;  %v1080_v13 = vpack.c.bf16 %v1077_v56, %v1075_v46 }
 0x132   : > { %v746_v50 = vadd.f32 %v724_v15, %v672_v12  ;;  %v2406_v15 = vstv %s1474_s13  ;;  %s1275_s13 = scalar_lea.sflag [#allocation3], %s218_s27 }
 0x133   : > { %v810_v60 = vpop.f32.mrf.mxu0 }
 0x134   : > { %v2378_v63 = vadd.f32 %v808_v28, %v746_v50 }
 0x137   : > { %v652_v43 = vpop.f32.mrf.mxu2  ;;  %v512_v23 = vpop.f32.mrf.mxu1 }
 0x138   : > { %v673_v24 = vadd.f32 %v652_v43, %v510_v38  ;;  %v726_v3 = vpop.f32.mrf.mxu3  ;;  %v513_v32 = vadd.f32 %v512_v23, %v2273_v7 }
 0x13a   : > { %v747_v9 = vadd.f32 %v726_v3, %v673_v24  ;;  %1446 = vmatmul.msk.bf16.gmra.mxu1 %vm363_vm2, %v2342_v39 }
 0x13b   : > { %v813_v57 = vpop.f32.mrf.mxu0 }
 0x13c   : > { %1455 = vmatmul.msk.bf16.gmra.mxu2 %vm363_vm2, %v915_v40  ;;  %v2388_v45 = vadd.f32 %v810_v60, %v747_v9 }
 0x13d   : > { %1464 = vmatmul.msk.bf16.gmra.mxu3 %vm363_vm2, %v999_v58 }
 0x13e   : > { %1473 = vmatmul.msk.bf16.gmra.mxu0 %vm363_vm2, %v1080_v13 }
 0x13f   : > { %v655_v16 = vpop.f32.mrf.mxu2  ;;  %v514_v22 = vpop.f32.mrf.mxu1 }
 0x140   : > { %v674_v62 = vadd.f32 %v655_v16, %v513_v32  ;;  %v729_v0 = vpop.f32.mrf.mxu3  ;;  %v515_v39 = vadd.f32 %v514_v22, %v2277_v41  ;;  %v2402_v41 = vld [vmem:[%s2541_s3] ss:$0 sm:$0xff]  ;;  %v2415_v22 = vstv %s1190_s23 }
 0x142   : > { %v748_v20 = vadd.f32 %v729_v0, %v674_v62 }
 0x143   : > { %v815_v11 = vpop.f32.mrf.mxu0 }
 0x144   : > { %v2393_v21 = vadd.f32 %v813_v57, %v748_v20 }
 0x147   : > { %v657_v51 = vpop.f32.mrf.mxu2  ;;  %v859_v33 = vpop.f32.mrf.mxu1 }
 0x148   : > { %v675_v35 = vadd.f32 %v657_v51, %v515_v39  ;;  %v731_v42 = vpop.f32.mrf.mxu3  ;;  %v899_v7 = vadd.f32 %v859_v33, %v2287_v52 }
 0x14a   : > { %v749_v37 = vadd.f32 %v731_v42, %v675_v35 }
 0x14b   : > { %v1098_v54 = vpop.f32.mrf.mxu0 }
 0x14c   : > { %v2396_v5 = vadd.f32 %v815_v11, %v749_v37 }
 0x14f   : > { %v933_v27 = vpop.f32.mrf.mxu2  ;;  %v861_v28 = vpop.f32.mrf.mxu1 }
 0x150   : > { %v973_v59 = vadd.f32 %v933_v27, %v899_v7  ;;  %v1017_v29 = vpop.f32.mrf.mxu3  ;;  %v900_v12 = vadd.f32 %v861_v28, %v2293_v47 }
 0x152   : > { %v1057_v18 = vadd.f32 %v1017_v29, %v973_v59 }
 0x153   : > { %v1100_v31 = vpop.f32.mrf.mxu0 }
 0x154   : > { %v1138_v14 = vadd.f32 %v1098_v54, %v1057_v18 }
 0x156   : > { %v1158_v49 = vadd.f32 %v2402_v41, %v1138_v14 }
 0x157   : > { %v935_v52 = vpop.f32.mrf.mxu2  ;;  %v864_v50 = vpop.f32.mrf.mxu1 }
 0x158   : > { %v1174_v53 = vmax.f32 %v1158_v49, 0.0  ;;  %v974_v30 = vadd.f32 %v935_v52, %v900_v12  ;;  %v1019_v36 = vpop.f32.mrf.mxu3  ;;  %v901_v47 = vadd.f32 %v864_v50, %v2299_v1 }
 0x15a   : > { %v1193_v60 = vmul.f32 %v2406_v15, %v1174_v53  ;;  %v1058_v61 = vadd.f32 %v1019_v36, %v974_v30 }
 0x15b   : > { %v1103_v34 = vpop.f32.mrf.mxu0 }
 0x15c   : > { %v1488_v2 = vcvt.f32.s32 %v1193_v60  ;;  %v1139_v38 = vadd.f32 %v1100_v31, %v1058_v61  ;;  %v1486_v43 = vand.u32 2147483647, %v1193_v60  ;;  %v1491_v24 = vand.u32 2147483648, %v1193_v60 }
 0x15e   : > { %v1489_v6 = vcvt.s32.f32 %v1488_v2  ;;  %v1159_v55 = vadd.f32 %v2402_v41, %v1139_v38  ;;  %vm1487_vm4 = vcmp.lt.f32.partialorder %v1486_v43, 8388608.0 }
 0x15f   : > { %v938_v23 = vpop.f32.mrf.mxu2  ;;  %v866_v46 = vpop.f32.mrf.mxu1 }
 0x160   : > { %v1490_v56 = vand.u32 2147483647, %v1489_v6  ;;  %v1175_v3 = vmax.f32 %v1159_v55, 0.0  ;;  %v975_v40 = vadd.f32 %v938_v23, %v901_v47  ;;  %v1022_v58 = vpop.f32.mrf.mxu3  ;;  %v902_v11 = vadd.f32 %v866_v46, %v2306_v44 }
 0x162   : > { %v1492_v9 = vor.u32 %v1491_v24, %v1490_v56  ;;  %v1194_v13 = vmul.f32 %v2406_v15, %v1175_v3  ;;  %v1059_v57 = vadd.f32 %v1022_v58, %v975_v40 }
 0x163   : > { %v1105_v32 = vpop.f32.mrf.mxu0 }
 0x164   : > { %v1493_v16 = vsel %vm1487_vm4, %v1492_v9, %v1193_v60  ;;  %v1496_v1 = vcvt.f32.s32 %v1194_v13  ;;  %v1140_v0 = vadd.f32 %v1103_v34, %v1059_v57  ;;  %v1494_v51 = vand.u32 2147483647, %v1194_v13 }
 0x165   : > { %v1225_v62 = vmin.f32 %v1493_v16, 255.0  ;;  %v1499_v54 = vand.u32 2147483648, %v1194_v13 }
 0x166   : > { %v1497_v20 = vcvt.s32.f32 %v1496_v1  ;;  %v1160_v33 = vadd.f32 %v2402_v41, %v1140_v0  ;;  %vm1495_vm5 = vcmp.lt.f32.partialorder %v1494_v51, 8388608.0 }
 0x167   : > { %v1242_v39 = vmul.f32 %v2415_v22, %v1225_v62  ;;  %v940_v35 = vpop.f32.mrf.mxu2  ;;  %v869_v42 = vpop.f32.mrf.mxu1 }
 0x168   : > { %v1498_v37 = vand.u32 2147483647, %v1497_v20  ;;  %v976_v7 = vadd.f32 %v940_v35, %v902_v11  ;;  %v1024_v27 = vpop.f32.mrf.mxu3  ;;  %v1176_v28 = vmax.f32 %v1160_v33, 0.0  ;;  %v903_v50 = vadd.f32 %v869_v42, %v2313_v19 }
 0x169   : > { %1258 = vst [vmem:[%s2420_s29] sm:$0xff] %v1242_v39 }
 0x16a   : > { %v1500_v59 = vor.u32 %v1499_v54, %v1498_v37  ;;  %v1060_v29 = vadd.f32 %v1024_v27, %v976_v7  ;;  %v1195_v44 = vmul.f32 %v2406_v15, %v1176_v28 }
 0x16b   : > { %v1108_v18 = vpop.f32.mrf.mxu0 }
 0x16c   : > { %v1501_v31 = vsel %vm1495_vm5, %v1500_v59, %v1194_v13  ;;  %v1141_v14 = vadd.f32 %v1105_v32, %v1060_v29  ;;  %v1504_v12 = vcvt.f32.s32 %v1195_v44  ;;  %v1502_v61 = vand.u32 2147483647, %v1195_v44 }
 0x16d   : > { %v1226_v49 = vmin.f32 %v1501_v31, 255.0  ;;  %v1507_v55 = vand.u32 2147483648, %v1195_v44 }
 0x16e   : > { %v1161_v52 = vadd.f32 %v2402_v41, %v1141_v14  ;;  %v1505_v30 = vcvt.s32.f32 %v1504_v12  ;;  %vm1503_vm6 = vcmp.lt.f32.partialorder %v1502_v61, 8388608.0 }
 0x16f   : > { %v1243_v53 = vmul.f32 %v2415_v22, %v1226_v49  ;;  %v943_v36 = vpop.f32.mrf.mxu2  ;;  %v871_v60 = vpop.f32.mrf.mxu1 }
 0x170   : > { %v1177_v34 = vmax.f32 %v1161_v52, 0.0  ;;  %v977_v2 = vadd.f32 %v943_v36, %v903_v50  ;;  %v1027_v38 = vpop.f32.mrf.mxu3  ;;  %v1506_v6 = vand.u32 2147483647, %v1505_v30  ;;  %v904_v9 = vadd.f32 %v871_v60, %v2320_v25 }
 0x171   : > { %1259 = vst [vmem:[%s2420_s29 + $0x8] sm:$0xff] %v1243_v53 }
 0x172   : > { %v1196_v47 = vmul.f32 %v2406_v15, %v1177_v34  ;;  %v1061_v43 = vadd.f32 %v1027_v38, %v977_v2  ;;  %v1508_v23 = vor.u32 %v1507_v55, %v1506_v6 }
 0x173   : > { %v1110_v46 = vpop.f32.mrf.mxu0 }
 0x174   : > { %v1512_v56 = vcvt.f32.s32 %v1196_v47  ;;  %v1142_v19 = vadd.f32 %v1108_v18, %v1061_v43  ;;  %v1509_v24 = vsel %vm1503_vm6, %v1508_v23, %v1195_v44  ;;  %v1510_v13 = vand.u32 2147483647, %v1196_v47 }
 0x175   : > { %v1227_v3 = vmin.f32 %v1509_v24, 255.0  ;;  %v1515_v57 = vand.u32 2147483648, %v1196_v47 }
 0x176   : > { %v1513_v40 = vcvt.s32.f32 %v1512_v56  ;;  %v1162_v58 = vadd.f32 %v2402_v41, %v1142_v19  ;;  %vm1511_vm7 = vcmp.lt.f32.partialorder %v1510_v13, 8388608.0 }
 0x177   : > { %v945_v32 = vpop.f32.mrf.mxu2  ;;  %v874_v16 = vpop.f32.mrf.mxu1  ;;  %v1244_v1 = vmul.f32 %v2415_v22, %v1227_v3 }
 0x178   : > { %v1514_v62 = vand.u32 2147483647, %v1513_v40  ;;  %v1178_v0 = vmax.f32 %v1162_v58, 0.0  ;;  %v978_v20 = vadd.f32 %v945_v32, %v904_v9  ;;  %v1029_v11 = vpop.f32.mrf.mxu3  ;;  %v905_v27 = vadd.f32 %v874_v16, %v2327_v48 }
 0x179   : > { %1260 = vst [vmem:[%s2420_s29 + $0x10] sm:$0xff] %v1244_v1 }
 0x17a   : > { %v1516_v39 = vor.u32 %v1515_v57, %v1514_v62  ;;  %v1197_v51 = vmul.f32 %v2406_v15, %v1178_v0  ;;  %v1062_v33 = vadd.f32 %v1029_v11, %v978_v20 }
 0x17b   : > { %v1113_v35 = vpop.f32.mrf.mxu0 }
 0x17c   : > { %v1517_v42 = vsel %vm1511_vm7, %v1516_v39, %v1196_v47  ;;  %v1520_v25 = vcvt.f32.s32 %v1197_v51  ;;  %v1143_v54 = vadd.f32 %v1110_v46, %v1062_v33  ;;  %v1518_v59 = vand.u32 2147483647, %v1197_v51 }
 0x17d   : > { %v1228_v37 = vmin.f32 %v1517_v42, 255.0  ;;  %v1523_v14 = vand.u32 2147483648, %v1197_v51 }
 0x17e   : > { %v1521_v7 = vcvt.s32.f32 %v1520_v25  ;;  %v1163_v29 = vadd.f32 %v2402_v41, %v1143_v54  ;;  %vm1519_vm8 = vcmp.lt.f32.partialorder %v1518_v59, 8388608.0 }
 0x17f   : > { %v1245_v28 = vmul.f32 %v2415_v22, %v1228_v37  ;;  %v948_v44 = vpop.f32.mrf.mxu2  ;;  %v876_v18 = vpop.f32.mrf.mxu1 }
 0x180   : > { %v1522_v31 = vand.u32 2147483647, %v1521_v7  ;;  %v979_v49 = vadd.f32 %v948_v44, %v905_v27  ;;  %v1032_v12 = vpop.f32.mrf.mxu3  ;;  %v1179_v52 = vmax.f32 %v1163_v29, 0.0  ;;  %v906_v38 = vadd.f32 %v876_v18, %v2338_v10 }
 0x181   : > { %1261 = vst [vmem:[%s2420_s29 + $0x18] sm:$0xff] %v1245_v28 }
 0x182   : > { %v1524_v50 = vor.u32 %v1523_v14, %v1522_v31  ;;  %v1063_v53 = vadd.f32 %v1032_v12, %v979_v49  ;;  %v1198_v30 = vmul.f32 %v2406_v15, %v1179_v52 }
 0x183   : > { %v1115_v48 = vpop.f32.mrf.mxu0 }
 0x184   : > { %v1525_v36 = vsel %vm1519_vm8, %v1524_v50, %v1197_v51  ;;  %v1144_v60 = vadd.f32 %v1113_v35, %v1063_v53  ;;  %v1528_v34 = vcvt.f32.s32 %v1198_v30  ;;  %v1526_v23 = vand.u32 2147483647, %v1198_v30 }
 0x185   : > { %v1229_v61 = vmin.f32 %v1525_v36, 255.0  ;;  %v1531_v3 = vand.u32 2147483648, %v1198_v30 }
 0x186   : > { %v1164_v2 = vadd.f32 %v2402_v41, %v1144_v60  ;;  %v1529_v55 = vcvt.s32.f32 %v1528_v34  ;;  %vm1527_vm9 = vcmp.lt.f32.partialorder %v1526_v23, 8388608.0 }
 0x187   : > { %v1246_v6 = vmul.f32 %v2415_v22, %v1229_v61  ;;  %v950_v47 = vpop.f32.mrf.mxu2  ;;  %v879_v43 = vpop.f32.mrf.mxu1 }
 0x188   : > { %v1180_v46 = vmax.f32 %v1164_v2, 0.0  ;;  %v980_v56 = vadd.f32 %v950_v47, %v906_v38  ;;  %v1034_v19 = vpop.f32.mrf.mxu3  ;;  %v1530_v24 = vand.u32 2147483647, %v1529_v55  ;;  %v907_v0 = vadd.f32 %v879_v43, %v2347_v26 }
 0x189   : > { %1262 = vst [vmem:[%s2420_s29 + $0x20] sm:$0xff] %v1246_v6 }
 0x18a   : > { %v1199_v40 = vmul.f32 %v2406_v15, %v1180_v46  ;;  %v1064_v58 = vadd.f32 %v1034_v19, %v980_v56  ;;  %v1532_v9 = vor.u32 %v1531_v3, %v1530_v24 }
 0x18b   : > { %v1118_v13 = vpop.f32.mrf.mxu0 }
 0x18c   : > { %v1536_v57 = vcvt.f32.s32 %v1199_v40  ;;  %v1145_v10 = vadd.f32 %v1115_v48, %v1064_v58  ;;  %v1533_v32 = vsel %vm1527_vm9, %v1532_v9, %v1198_v30  ;;  %v1534_v20 = vand.u32 2147483647, %v1199_v40 }
 0x18d   : > { %v1230_v16 = vmin.f32 %v1533_v32, 255.0  ;;  %v1539_v11 = vand.u32 2147483648, %v1199_v40 }
 0x18e   : > { %v1537_v1 = vcvt.s32.f32 %v1536_v57  ;;  %v1165_v62 = vadd.f32 %v2402_v41, %v1145_v10  ;;  %vm1535_vm10 = vcmp.lt.f32.partialorder %v1534_v20, 8388608.0 }
 0x18f   : > { %v953_v39 = vpop.f32.mrf.mxu2  ;;  %v881_v51 = vpop.f32.mrf.mxu1  ;;  %v1247_v33 = vmul.f32 %v2415_v22, %v1230_v16 }
 0x190   : > { %v1538_v35 = vand.u32 2147483647, %v1537_v1  ;;  %v1181_v42 = vmax.f32 %v1165_v62, 0.0  ;;  %v981_v25 = vadd.f32 %v953_v39, %v907_v0  ;;  %v1037_v37 = vpop.f32.mrf.mxu3  ;;  %v908_v31 = vadd.f32 %v881_v51, %v2354_v17 }
 0x191   : > { %1263 = vst [vmem:[%s2420_s29 + $0x28] sm:$0xff] %v1247_v33 }
 0x192   : > { %v1540_v54 = vor.u32 %v1539_v11, %v1538_v35  ;;  %v1200_v7 = vmul.f32 %v2406_v15, %v1181_v42  ;;  %v1065_v27 = vadd.f32 %v1037_v37, %v981_v25 }
 0x193   : > { %v1120_v28 = vpop.f32.mrf.mxu0 }
 0x194   : > { %v1541_v59 = vsel %vm1535_vm10, %v1540_v54, %v1199_v40  ;;  %v1544_v26 = vcvt.f32.s32 %v1200_v7  ;;  %v1146_v44 = vadd.f32 %v1118_v13, %v1065_v27  ;;  %v1542_v49 = vand.u32 2147483647, %v1200_v7 }
 0x195   : > { %v1231_v29 = vmin.f32 %v1541_v59, 255.0  ;;  %v1547_v30 = vand.u32 2147483648, %v1200_v7 }
 0x196   : > { %v1545_v18 = vcvt.s32.f32 %v1544_v26  ;;  %v1166_v12 = vadd.f32 %v2402_v41, %v1146_v44  ;;  %vm1543_vm11 = vcmp.lt.f32.partialorder %v1542_v49, 8388608.0 }
 0x197   : > { %v1248_v14 = vmul.f32 %v2415_v22, %v1231_v29  ;;  %v955_v52 = vpop.f32.mrf.mxu2  ;;  %v884_v50 = vpop.f32.mrf.mxu1 }
 0x198   : > { %v1546_v53 = vand.u32 2147483647, %v1545_v18  ;;  %v982_v48 = vadd.f32 %v955_v52, %v908_v31  ;;  %v1039_v36 = vpop.f32.mrf.mxu3  ;;  %v1182_v60 = vmax.f32 %v1166_v12, 0.0  ;;  %v909_v23 = vadd.f32 %v884_v50, %v2361_v4 }
 0x199   : > { %1264 = vst [vmem:[%s2420_s29 + $0x30] sm:$0xff] %v1248_v14 }
 0x19a   : > { %v1548_v61 = vor.u32 %v1547_v30, %v1546_v53  ;;  %v1066_v34 = vadd.f32 %v1039_v36, %v982_v48  ;;  %v1201_v2 = vmul.f32 %v2406_v15, %v1182_v60 }
 0x19b   : > { %v1123_v17 = vpop.f32.mrf.mxu0 }
 0x19c   : > { %v1549_v38 = vsel %vm1543_vm11, %v1548_v61, %v1200_v7  ;;  %v1147_v6 = vadd.f32 %v1120_v28, %v1066_v34  ;;  %v1552_v47 = vcvt.f32.s32 %v1201_v2  ;;  %v1550_v3 = vand.u32 2147483647, %v1201_v2 }
 0x19d   : > { %v1232_v55 = vmin.f32 %v1549_v38, 255.0  ;;  %v1555_v57 = vand.u32 2147483648, %v1201_v2 }
 0x19e   : > { %v1167_v43 = vadd.f32 %v2402_v41, %v1147_v6  ;;  %v1553_v56 = vcvt.s32.f32 %v1552_v47  ;;  %vm1551_vm12 = vcmp.lt.f32.partialorder %v1550_v3, 8388608.0 }
 0x19f   : > { %v1249_v46 = vmul.f32 %v2415_v22, %v1232_v55  ;;  %v958_v19 = vpop.f32.mrf.mxu2  ;;  %v886_v24 = vpop.f32.mrf.mxu1 }
 0x1a0   : > { %v1183_v40 = vmax.f32 %v1167_v43, 0.0  ;;  %v983_v58 = vadd.f32 %v958_v19, %v909_v23  ;;  %v1042_v9 = vpop.f32.mrf.mxu3  ;;  %v1554_v13 = vand.u32 2147483647, %v1553_v56  ;;  %v910_v51 = vadd.f32 %v886_v24, %v2368_v8 }
 0x1a1   : > { %1265 = vst [vmem:[%s2420_s29 + $0x38] sm:$0xff] %v1249_v46 }
 0x1a2   : > { %v1202_v10 = vmul.f32 %v2406_v15, %v1183_v40  ;;  %v1067_v32 = vadd.f32 %v1042_v9, %v983_v58  ;;  %v1556_v16 = vor.u32 %v1555_v57, %v1554_v13 }
 0x1a3   : > { %v1125_v1 = vpop.f32.mrf.mxu0 }
 0x1a4   : > { %v1560_v62 = vcvt.f32.s32 %v1202_v10  ;;  %v1148_v4 = vadd.f32 %v1123_v17, %v1067_v32  ;;  %v1557_v0 = vsel %vm1551_vm12, %v1556_v16, %v1201_v2  ;;  %v1558_v33 = vand.u32 2147483647, %v1202_v10 }
 0x1a5   : > { %v1233_v20 = vmin.f32 %v1557_v0, 255.0  ;;  %v1563_v35 = vand.u32 2147483648, %v1202_v10 }
 0x1a6   : > { %v1561_v11 = vcvt.s32.f32 %v1560_v62  ;;  %v1168_v39 = vadd.f32 %v2402_v41, %v1148_v4  ;;  %vm1559_vm13 = vcmp.lt.f32.partialorder %v1558_v33, 8388608.0 }
 0x1a7   : > { %v960_v42 = vpop.f32.mrf.mxu2  ;;  %v889_v25 = vpop.f32.mrf.mxu1  ;;  %v1250_v37 = vmul.f32 %v2415_v22, %v1233_v20 }
 0x1a8   : > { %v1562_v54 = vand.u32 2147483647, %v1561_v11  ;;  %v1184_v7 = vmax.f32 %v1168_v39, 0.0  ;;  %v984_v27 = vadd.f32 %v960_v42, %v910_v51  ;;  %v1044_v28 = vpop.f32.mrf.mxu3  ;;  %v911_v12 = vadd.f32 %v889_v25, %v2378_v63 }
 0x1a9   : > { %1266 = vst [vmem:[%s2420_s29 + $0x40] sm:$0xff] %v1250_v37 }
 0x1aa   : > { %v1564_v59 = vor.u32 %v1563_v35, %v1562_v54  ;;  %v1203_v26 = vmul.f32 %v2406_v15, %v1184_v7  ;;  %v1068_v29 = vadd.f32 %v1044_v28, %v984_v27 }
 0x1ab   : > { %v1128_v14 = vpop.f32.mrf.mxu0 }
 0x1ac   : > { %v1565_v44 = vsel %vm1559_vm13, %v1564_v59, %v1202_v10  ;;  %v1568_v18 = vcvt.f32.s32 %v1203_v26  ;;  %v1149_v31 = vadd.f32 %v1125_v1, %v1068_v29  ;;  %v1566_v50 = vand.u32 2147483647, %v1203_v26 }
 0x1ad   : > { %v1234_v8 = vmin.f32 %v1565_v44, 255.0  ;;  %v1571_v60 = vand.u32 2147483648, %v1203_v26 }
 0x1ae   : > { %v1569_v49 = vcvt.s32.f32 %v1568_v18  ;;  %v1169_v53 = vadd.f32 %v2402_v41, %v1149_v31  ;;  %vm1567_vm14 = vcmp.lt.f32.partialorder %v1566_v50, 8388608.0 }
 0x1af   : > { %v1251_v52 = vmul.f32 %v2415_v22, %v1234_v8  ;;  %v963_v30 = vpop.f32.mrf.mxu2  ;;  %v891_v48 = vpop.f32.mrf.mxu1 }
 0x1b0   : > { %v1570_v36 = vand.u32 2147483647, %v1569_v49  ;;  %v985_v61 = vadd.f32 %v963_v30, %v911_v12  ;;  %v1047_v34 = vpop.f32.mrf.mxu3  ;;  %v1185_v2 = vmax.f32 %v1169_v53, 0.0  ;;  %v912_v46 = vadd.f32 %v891_v48, %v2388_v45 }
 0x1b1   : > { %1267 = vst [vmem:[%s2420_s29 + $0x48] sm:$0xff] %v1251_v52 }
 0x1b2   : > { %v1572_v17 = vor.u32 %v1571_v60, %v1570_v36  ;;  %v1069_v38 = vadd.f32 %v1047_v34, %v985_v61  ;;  %v1204_v6 = vmul.f32 %v2406_v15, %v1185_v2 }
 0x1b3   : > { %v1130_v24 = vpop.f32.mrf.mxu0 }
 0x1b4   : > { %v1573_v63 = vsel %vm1567_vm14, %v1572_v17, %v1203_v26  ;;  %v1150_v55 = vadd.f32 %v1128_v14, %v1069_v38  ;;  %v1576_v43 = vcvt.f32.s32 %v1204_v6  ;;  %v1574_v40 = vand.u32 2147483647, %v1204_v6 }
 0x1b5   : > { %v1235_v47 = vmin.f32 %v1573_v63, 255.0  ;;  %v1579_v10 = vand.u32 2147483648, %v1204_v6 }
 0x1b6   : > { %v1170_v23 = vadd.f32 %v2402_v41, %v1150_v55  ;;  %v1577_v19 = vcvt.s32.f32 %v1576_v43  ;;  %vm1575_vm15 = vcmp.lt.f32.partialorder %v1574_v40, 8388608.0 }
 0x1b7   : > { %v1252_v56 = vmul.f32 %v2415_v22, %v1235_v47  ;;  %v965_v3 = vpop.f32.mrf.mxu2  ;;  %v894_v32 = vpop.f32.mrf.mxu1 }
 0x1b8   : > { %v1186_v58 = vmax.f32 %v1170_v23, 0.0  ;;  %v986_v9 = vadd.f32 %v965_v3, %v912_v46  ;;  %v1049_v13 = vpop.f32.mrf.mxu3  ;;  %v1578_v57 = vand.u32 2147483647, %v1577_v19  ;;  %v913_v51 = vadd.f32 %v894_v32, %v2393_v21 }
 0x1b9   : > { %1268 = vst [vmem:[%s2420_s29 + $0x50] sm:$0xff] %v1252_v56 }
 0x1ba   : > { %v1205_v16 = vmul.f32 %v2406_v15, %v1186_v58  ;;  %v1070_v1 = vadd.f32 %v1049_v13, %v986_v9  ;;  %v1580_v62 = vor.u32 %v1579_v10, %v1578_v57 }
 0x1bb   : > { %v1133_v28 = vpop.f32.mrf.mxu0 }
 0x1bc   : > { %v1584_v4 = vcvt.f32.s32 %v1205_v16  ;;  %v1151_v45 = vadd.f32 %v1130_v24, %v1070_v1  ;;  %v1581_v0 = vsel %vm1575_vm15, %v1580_v62, %v1204_v6  ;;  %v1582_v33 = vand.u32 2147483647, %v1205_v16 }
 0x1bd   : > { %v1236_v20 = vmin.f32 %v1581_v0, 255.0  ;;  %v1587_v35 = vand.u32 2147483648, %v1205_v16 }
 0x1be   : > { %v1585_v11 = vcvt.s32.f32 %v1584_v4  ;;  %v1171_v39 = vadd.f32 %v2402_v41, %v1151_v45  ;;  %vm1583_vm0 = vcmp.lt.f32.partialorder %v1582_v33, 8388608.0 }
 0x1bf   : > { %v968_v42 = vpop.f32.mrf.mxu2  ;;  %v1253_v25 = vmul.f32 %v2415_v22, %v1236_v20  ;;  %v896_v44 = vpop.f32.mrf.mxu1 }
 0x1c0   : > { %v1586_v37 = vand.u32 2147483647, %v1585_v11  ;;  %v1187_v54 = vmax.f32 %v1171_v39, 0.0  ;;  %v987_v7 = vadd.f32 %v968_v42, %v913_v51  ;;  %v1052_v27 = vpop.f32.mrf.mxu3  ;;  %v914_v49 = vadd.f32 %v896_v44, %v2396_v5 }
 0x1c1   : > { %1269 = vst [vmem:[%s2420_s29 + $0x58] sm:$0xff] %v1253_v25 }
 0x1c2   : > { %v1588_v59 = vor.u32 %v1587_v35, %v1586_v37  ;;  %v1206_v26 = vmul.f32 %v2406_v15, %v1187_v54  ;;  %v1071_v29 = vadd.f32 %v1052_v27, %v987_v7 }
 0x1c3   : > { %v1135_v5 = vpop.f32.mrf.mxu0 }
 0x1c4   : > { %v1589_v18 = vsel %vm1583_vm0, %v1588_v59, %v1205_v16  ;;  %v1592_v21 = vcvt.f32.s32 %v1206_v26  ;;  %v1152_v31 = vadd.f32 %v1133_v28, %v1071_v29  ;;  %v1590_v52 = vand.u32 2147483647, %v1206_v26 }
 0x1c5   : > { %v1237_v8 = vmin.f32 %v1589_v18, 255.0  ;;  %v1595_v48 = vand.u32 2147483648, %v1206_v26 }
 0x1c6   : > { %v1593_v14 = vcvt.s32.f32 %v1592_v21  ;;  %v1172_v50 = vadd.f32 %v2402_v41, %v1152_v31  ;;  %vm1591_vm1 = vcmp.lt.f32.partialorder %v1590_v52, 8388608.0 }
 0x1c7   : > { %v1254_v12 = vmul.f32 %v2415_v22, %v1237_v8  ;;  %v970_v53 = vpop.f32.mrf.mxu2 }
 0x1c8   : > { %v1594_v30 = vand.u32 2147483647, %v1593_v14  ;;  %v988_v36 = vadd.f32 %v970_v53, %v914_v49  ;;  %v1188_v60 = vmax.f32 %v1172_v50, 0.0  ;;  %v1054_v61 = vpop.f32.mrf.mxu3 }
 0x1c9   : > { %1270 = vst [vmem:[%s2420_s29 + $0x60] sm:$0xff] %v1254_v12 }
 0x1ca   : > { %v1596_v34 = vor.u32 %v1595_v48, %v1594_v30  ;;  %v1072_v2 = vadd.f32 %v1054_v61, %v988_v36  ;;  %v1207_v17 = vmul.f32 %v2406_v15, %v1188_v60 }
 0x1cc   : > { %v1597_v38 = vsel %vm1591_vm1, %v1596_v34, %v1206_v26  ;;  %v1153_v6 = vadd.f32 %v1135_v5, %v1072_v2  ;;  %v1600_v55 = vcvt.f32.s32 %v1207_v17  ;;  %v1598_v46 = vand.u32 2147483647, %v1207_v17 }
 0x1cd   : > { %v1238_v63 = vmin.f32 %v1597_v38, 255.0  ;;  %v1603_v24 = vand.u32 2147483648, %v1207_v17 }
 0x1ce   : > { %v1173_v47 = vadd.f32 %v2402_v41, %v1153_v6  ;;  %v1601_v23 = vcvt.s32.f32 %v1600_v55  ;;  %vm1599_vm2 = vcmp.lt.f32.partialorder %v1598_v46, 8388608.0 }
 0x1cf   : > { %v1255_v43 = vmul.f32 %v2415_v22, %v1238_v63 }
 0x1d0   : > { %v1189_v56 = vmax.f32 %v1173_v47, 0.0  ;;  %v1602_v19 = vand.u32 2147483647, %v1601_v23 }
 0x1d1   : > { %1271 = vst [vmem:[%s2420_s29 + $0x68] sm:$0xff] %v1255_v43 }
 0x1d2   : > { %v1208_v3 = vmul.f32 %v2406_v15, %v1189_v56  ;;  %v1604_v40 = vor.u32 %v1603_v24, %v1602_v19 }
 0x1d4   : > { %v1608_v58 = vcvt.f32.s32 %v1208_v3  ;;  %v1605_v9 = vsel %vm1599_vm2, %v1604_v40, %v1207_v17  ;;  %v1606_v57 = vand.u32 2147483647, %v1208_v3  ;;  %v1611_v16 = vand.u32 2147483648, %v1208_v3 }
 0x1d5   : > { %v1239_v41 = vmin.f32 %v1605_v9, 255.0 }
 0x1d6   : > { %v1609_v13 = vcvt.s32.f32 %v1608_v58  ;;  %vm1607_vm3 = vcmp.lt.f32.partialorder %v1606_v57, 8388608.0 }
 0x1d7   : > { %v1256_v10 = vmul.f32 %v2415_v22, %v1239_v41 }
 0x1d8   : > { %v1610_v32 = vand.u32 2147483647, %v1609_v13 }
 0x1d9   : > { %1272 = vst [vmem:[%s2420_s29 + $0x70] sm:$0xff] %v1256_v10 }
 0x1da   : > { %v1612_v15 = vor.u32 %v1611_v16, %v1610_v32 }
 0x1dc   : > { %v1613_v1 = vsel %vm1607_vm3, %v1612_v15, %v1208_v3 }
 0x1dd   : > { %v1240_v62 = vmin.f32 %v1613_v1, 255.0 }
 0x1df   : > { %v1257_v4 = vmul.f32 %v2415_v22, %v1240_v62 }
 0x1e1   : > { %1273 = vst [vmem:[%s2420_s29 + $0x78] sm:$0xff] %v1257_v4 }
 0x1e2   : > { %1741 = shalt.err (!%p1738_p10)
}
 0x1e3   : > { %s1815_s27 = smov 128   ;;  %s1816_s29 = smov 8  }
 0x1e4   : > { %1618 = dma.vmem_to_hbm [thread:$0]  (%p1896_p5), %s1290_s18, 2048, %s1292_s11, %s1275_s13, %s1815_s27, %s1815_s27, %s1816_s29  }
 0x1e5 PF: > { %p1630_p11 = scmp.ge.s32.totalorder %s1812_s22, 2  ;;  %s1306_s19 = sand.u32 1, %s1784_s15  }
 0x1e6   : > { %s1307_s9 = scalar_lea.sflag [#allocation3], %s1306_s19 }
 0x1e7   : > { %p1625_p12 = pnand %p1630_p11, %p1902_p7 }
 0x1e9   : > { %p1626_p13 = pneg %p1625_p12 }
 0x1eb   : > { %1779 = dma.done.wait (%p1626_p13), %s1307_s9, 2048  }
 0x1ec   : > { %1781 = vsyncadd (%p1626_p13), %s1307_s9, 4294965248  ;;  %s18_s22 = sadd.s32 1, %s1812_s22   ;;  %s2545_s15 = smov %s1788_s16 }
 0x1ed   : > { %p15_p0 = scmp.ge.s32.totalorder %s18_s22, 6   ;;  %s2546_s16 = smov %s1792_s17 }
 0x1ee   : > { %s2547_s17 = smov %s1914_s12  ;;  %s2548_s18 = smov %s1804_s20 }
 0x1ef   : > { %s2549_s19 = smov %s1808_s21  ;;  %s2550_s20 = smov %s2553_s25 }
 0x1f0   : > { %s2551_s21 = smov %s2557_s26  ;;  %17 = sbr.rel (!%p15_p0) target bundleno = 6 (0x6), region = 85 }
 0x1f5   :  { %1313 = vsyncpa [#allocation3], 1 }
 0x1f6   :  { %1315 = vsyncpa [#allocation3 + $0x1], 1 }
 0x1f7   :  { %1316 = vsyncpa [#allocation4], 1 }
 0x1f8   :  { %1318 = vsyncpa [#allocation4 + $0x1], 1 }

</bundles_post_ra>
